<compile_context>
chip_gen: v7x
topology: tpu7x:2x2x1
jax: 0.10.0
libtpu: 0.0.40
codegen_flags: <defaults>
</compile_context>

<pallas_src>
import functools

import jax
import jax.numpy as jnp
from jax import lax
from jax.experimental import pallas as pl
from jax.experimental.pallas import tpu as pltpu

# Small synthetic config (the PyTorch module reads all of these from `config`).
# NOTE: the original module hard-codes fc = Linear(1632, num_classes) which
# only matches the full-size spectra length; here the fc input dim is derived
# from the small test shapes instead.
CONFIG = {
    "mode": "spectra",            # -> classification head enabled
    "s_dropout": 0.1,             # dropout rate (identity at inference)
    "s_conv_channels": [4, 16, 16, 8],
    "s_kernel_size": 3,
    "s_mp_kernel_size": 2,
    "num_classes": 5,
}

_DOT_PREC = jax.lax.Precision.HIGHEST   # full-f32 MXU contraction


# ----------------------------------------------------------------------------
# Fused Pallas kernel
# ----------------------------------------------------------------------------
def _maxpool_lanes(h, m):
    """Floor-mode MaxPool1d along the lane (length) axis of a (C, L) value.

    Decimation is done with one-hot (Lt, Lp) selection matmuls (MXU has slack
    at these sizes) so the length axis stays lane-dense — no lane-strided
    slices, no (C, Lp, m) minor-dim reshape.
    """
    _, l = h.shape
    lp = l // m
    lt = lp * m
    hv = h[:, :lt]
    row = lax.broadcasted_iota(jnp.int32, (lt, lp), 0)
    col = lax.broadcasted_iota(jnp.int32, (lt, lp), 1)
    out = None
    for j in range(m):
        sel = (row == m * col + j).astype(hv.dtype)          # one-hot (lt, lp)
        cand = jnp.dot(hv, sel, precision=_DOT_PREC,
                       preferred_element_type=jnp.float32)   # (C, lp)
        out = cand if out is None else jnp.maximum(out, cand)
    return out


def _fused_kernel(*refs, n_conv, ksize, mpool, classify):
    # refs = x, (w, b) * n_conv, [fcw, fcb], out, col_scratch, flat_scratch
    it = iter(refs)
    x_ref = next(it)
    conv_refs = [(next(it), next(it)) for _ in range(n_conv)]
    if classify:
        fcw_ref = next(it)
        fcb_ref = next(it)
    o_ref = next(it)
    col_ref = next(it)
    flat_ref = next(it)

    h = x_ref[0]                                             # (C0, L0) f32
    for li, (w_ref, b_ref) in enumerate(conv_refs):
        cin, lin = h.shape
        lout = lin - ksize + 1
        # im2col: row k*cin + c of the column block holds x[c, k : k + lout].
        for k in range(ksize):
            col_ref[k * cin:(k + 1) * cin, 0:lout] = h[:, k:k + lout]
        xcol = col_ref[0:ksize * cin, 0:lout]                # (K*Cin, Lout)
        acc = jnp.dot(w_ref[...], xcol, precision=_DOT_PREC,
                      preferred_element_type=jnp.float32)    # (Cout, Lout)
        h = jnp.maximum(acc + b_ref[...], 0.0)               # bias + ReLU
        if li < n_conv - 1:
            h = _maxpool_lanes(h, mpool)                     # fused pooling

    # Flatten (C, L) -> (1, C*L) row-major (== torch .view(B, -1)).
    c_last, l_last = h.shape
    for c in range(c_last):
        flat_ref[0:1, c * l_last:(c + 1) * l_last] = h[c:c + 1, :]
    flat = flat_ref[...]

    # TODO(synk): nn.Dropout is a no-op (identity) at inference; not implemented.
    if classify:
        logits = lax.dot_general(flat, fcw_ref[...],
                                 (((1,), (1,)), ((), ())),   # contract F vs F
                                 precision=_DOT_PREC,
                                 preferred_element_type=jnp.float32)
        o_ref[0] = logits + fcb_ref[...]
    else:
        o_ref[0] = flat


# ----------------------------------------------------------------------------
# Wrapper (parameter reshaping + pallas_call setup)
# ----------------------------------------------------------------------------
def galspecnet_forward(params, x, config):
    chans = config["s_conv_channels"]
    ksize = config["s_kernel_size"]
    mpool = config["s_mp_kernel_size"]
    classify = config["mode"] == "spectra"
    n_conv = len(chans) - 1
    B, c0, l0 = x.shape
    assert c0 == chans[0]

    # Static per-layer lengths.
    conv_louts = []
    lcur = l0
    for i in range(n_conv):
        lcur = lcur - ksize + 1
        conv_louts.append(lcur)
        if i < n_conv - 1:
            lcur = lcur // mpool
    feat = chans[-1] * lcur

    # Conv weights flattened to (Cout, K*Cin), row-major (k, cin) ordering,
    # matching the im2col column block built inside the kernel.
    w_flat = [jnp.transpose(w, (0, 2, 1)).reshape(w.shape[0], -1)
              for w in params["conv_w"]]
    b_col = [b.reshape(-1, 1) for b in params["conv_b"]]

    inputs = [x]
    in_specs = [pl.BlockSpec((1, c0, l0), lambda i: (i, 0, 0))]
    for wf, bc in zip(w_flat, b_col):
        inputs += [wf, bc]
        in_specs += [pl.BlockSpec(wf.shape, lambda i: (0, 0)),
                     pl.BlockSpec(bc.shape, lambda i: (0, 0))]
    if classify:
        nclass = params["fc_w"].shape[0]
        inputs += [params["fc_w"], params["fc_b"].reshape(1, nclass)]
        in_specs += [pl.BlockSpec(params["fc_w"].shape, lambda i: (0, 0)),
                     pl.BlockSpec((1, nclass), lambda i: (0, 0))]
        out_dim = nclass
    else:
        out_dim = feat

    kernel = functools.partial(_fused_kernel, n_conv=n_conv, ksize=ksize,
                               mpool=mpool, classify=classify)

    col_rows = ksize * max(chans[:-1])   # largest im2col row count
    col_cols = max(conv_louts)           # largest conv output length

    out = pl.pallas_call(
        kernel,
        out_shape=jax.ShapeDtypeStruct((B, 1, out_dim), jnp.float32),
        grid=(B,),
        in_specs=in_specs,
        out_specs=pl.BlockSpec((1, 1, out_dim), lambda i: (i, 0, 0)),
        scratch_shapes=[
            pltpu.VMEM((col_rows, col_cols), jnp.float32),   # im2col block
            pltpu.VMEM((1, feat), jnp.float32),              # flattened feats
        ],
        compiler_params=pltpu.CompilerParams(
            dimension_semantics=("parallel",)),              # batch across TCs
    )(*inputs)
    return out.reshape(B, out_dim)


# ----------------------------------------------------------------------------
# Parameters + pure-JAX reference
# ----------------------------------------------------------------------------
def init_params(key, config, input_len):
    chans = config["s_conv_channels"]
    K = config["s_kernel_size"]
    M = config["s_mp_kernel_size"]
    n_conv = len(chans) - 1
    conv_w, conv_b = [], []
    L = input_len
    for i in range(n_conv):
        key, k1, k2 = jax.random.split(key, 3)
        fan_in = chans[i] * K
        conv_w.append(jax.random.normal(k1, (chans[i + 1], chans[i], K),
                                        jnp.float32) / jnp.sqrt(fan_in))
        conv_b.append(jax.random.normal(k2, (chans[i + 1],), jnp.float32) * 0.1)
        L = L - K + 1
        if i < n_conv - 1:
            L = L // M
    fc_in = chans[-1] * L
    key, k1, k2 = jax.random.split(key, 3)
    fc_w = jax.random.normal(k1, (config["num_classes"], fc_in),
                             jnp.float32) / jnp.sqrt(fc_in)
    fc_b = jax.random.normal(k2, (config["num_classes"],), jnp.float32) * 0.1
    return {"conv_w": conv_w, "conv_b": conv_b, "fc_w": fc_w, "fc_b": fc_b}


def reference_forward(params, x, config):
    """Independent pure-JAX reference matching PyTorch semantics."""
    M = config["s_mp_kernel_size"]
    n_conv = len(config["s_conv_channels"]) - 1
    h = x
    for i in range(n_conv):
        h = jax.lax.conv_general_dilated(
            h, params["conv_w"][i], (1,), "VALID",
            dimension_numbers=("NCH", "OIH", "NCH"),
            precision=jax.lax.Precision.HIGHEST)
        h = jnp.maximum(h + params["conv_b"][i][None, :, None], 0.0)
        if i < n_conv - 1:
            B, C, L = h.shape
            Lp = L // M
            h = h[:, :, :Lp * M].reshape(B, C, Lp, M).max(axis=-1)
    h = h.reshape(h.shape[0], -1)
    if config["mode"] == "spectra":
        h = jnp.dot(h, params["fc_w"].T,
                    precision=jax.lax.Precision.HIGHEST) + params["fc_b"]
    return h


if __name__ == "__main__":
    B, L0 = 2, 64
    Cin = CONFIG["s_conv_channels"][0]

    key = jax.random.PRNGKey(0)
    key, xk = jax.random.split(key)
    x = jax.random.normal(xk, (B, Cin, L0), jnp.float32)
    params = init_params(key, CONFIG, L0)

    fwd = jax.jit(functools.partial(galspecnet_forward, config=CONFIG))
    out = jax.block_until_ready(fwd(params, x))

    ref = reference_forward(params, x, CONFIG)
    assert out.shape == ref.shape == (B, CONFIG["num_classes"]), (out.shape, ref.shape)
    max_err = float(jnp.max(jnp.abs(out - ref)))
    assert max_err < 1e-3, f"max abs error too large: {max_err}"

    print("KERNEL_OK")
</pallas_src>

<mosaic_0001>
module attributes {stable_mosaic.version = 11 : i64} {
  func.func @_fused_kernel(%arg0: i32, %arg1: memref<1x4x64xf32, #tpu.memory_space<vmem>>, %arg2: memref<16x12xf32, #tpu.memory_space<vmem>>, %arg3: memref<16x1xf32, #tpu.memory_space<vmem>>, %arg4: memref<16x48xf32, #tpu.memory_space<vmem>>, %arg5: memref<16x1xf32, #tpu.memory_space<vmem>>, %arg6: memref<8x48xf32, #tpu.memory_space<vmem>>, %arg7: memref<8x1xf32, #tpu.memory_space<vmem>>, %arg8: memref<5x96xf32, #tpu.memory_space<vmem>>, %arg9: memref<1x5xf32, #tpu.memory_space<vmem>>, %arg10: memref<1x1x5xf32, #tpu.memory_space<vmem>>, %arg11: memref<48x62xf32, #tpu.memory_space<vmem>>, %arg12: memref<1x96xf32, #tpu.memory_space<vmem>>) attributes {dimension_semantics = [#tpu.dimension_semantics<parallel>], iteration_bounds = array<i64: 2>, scalar_prefetch = 0 : i64, scratch_operands = 2 : i64, tpu.core_type = #tpu.core_type<tc>, window_params = [{transform_indices = @transform_0, window_bounds = array<i64: 1, 4, 64>}, {pipeline_mode = #tpu.pipeline_mode<synchronous>, transform_indices = @transform_1, window_bounds = array<i64: 16, 12>}, {pipeline_mode = #tpu.pipeline_mode<synchronous>, transform_indices = @transform_2, window_bounds = array<i64: 16, 1>}, {pipeline_mode = #tpu.pipeline_mode<synchronous>, transform_indices = @transform_3, window_bounds = array<i64: 16, 48>}, {pipeline_mode = #tpu.pipeline_mode<synchronous>, transform_indices = @transform_4, window_bounds = array<i64: 16, 1>}, {pipeline_mode = #tpu.pipeline_mode<synchronous>, transform_indices = @transform_5, window_bounds = array<i64: 8, 48>}, {pipeline_mode = #tpu.pipeline_mode<synchronous>, transform_indices = @transform_6, window_bounds = array<i64: 8, 1>}, {pipeline_mode = #tpu.pipeline_mode<synchronous>, transform_indices = @transform_7, window_bounds = array<i64: 5, 96>}, {pipeline_mode = #tpu.pipeline_mode<synchronous>, transform_indices = @transform_8, window_bounds = array<i64: 1, 5>}, {transform_indices = @transform_9, window_bounds = array<i64: 1, 1, 5>}]} {
    %c0 = arith.constant 0 : index
    %c0_0 = arith.constant 0 : index
    %c0_1 = arith.constant 0 : index
    %0 = vector.load %arg1[%c0, %c0_0, %c0_1] : memref<1x4x64xf32, #tpu.memory_space<vmem>>, vector<1x4x64xf32>
    %1 = vector.shape_cast %0 : vector<1x4x64xf32> to vector<4x64xf32>
    %2 = vector.extract_strided_slice %1 {offsets = [0, 0], sizes = [4, 62], strides = [1, 1]} : vector<4x64xf32> to vector<4x62xf32>
    %c0_2 = arith.constant 0 : index
    %c0_3 = arith.constant 0 : index
    %3 = vector.load %arg11[%c0_2, %c0_3] : memref<48x62xf32, #tpu.memory_space<vmem>>, vector<4x62xf32>
    tpu.vector_store %arg11[%c0_2, %c0_3], %2 {strides = array<i32>} : memref<48x62xf32, #tpu.memory_space<vmem>>, vector<4x62xf32>,
    %4 = vector.extract_strided_slice %1 {offsets = [0, 1], sizes = [4, 62], strides = [1, 1]} : vector<4x64xf32> to vector<4x62xf32>
    %c4 = arith.constant 4 : index
    %c0_4 = arith.constant 0 : index
    %5 = vector.load %arg11[%c4, %c0_4] : memref<48x62xf32, #tpu.memory_space<vmem>>, vector<4x62xf32>
    tpu.vector_store %arg11[%c4, %c0_4], %4 {strides = array<i32>} : memref<48x62xf32, #tpu.memory_space<vmem>>, vector<4x62xf32>,
    %6 = vector.extract_strided_slice %1 {offsets = [0, 2], sizes = [4, 62], strides = [1, 1]} : vector<4x64xf32> to vector<4x62xf32>
    %c8 = arith.constant 8 : index
    %c0_5 = arith.constant 0 : index
    %7 = vector.load %arg11[%c8, %c0_5] : memref<48x62xf32, #tpu.memory_space<vmem>>, vector<4x62xf32>
    tpu.vector_store %arg11[%c8, %c0_5], %6 {strides = array<i32>} : memref<48x62xf32, #tpu.memory_space<vmem>>, vector<4x62xf32>,
    %c0_6 = arith.constant 0 : index
    %c0_7 = arith.constant 0 : index
    %8 = vector.load %arg11[%c0_6, %c0_7] : memref<48x62xf32, #tpu.memory_space<vmem>>, vector<12x62xf32>
    %c0_8 = arith.constant 0 : index
    %c0_9 = arith.constant 0 : index
    %9 = vector.load %arg2[%c0_8, %c0_9] : memref<16x12xf32, #tpu.memory_space<vmem>>, vector<16x12xf32>
    %cst = arith.constant dense<0.000000e+00> : vector<16x62xf32>
    %10 = tpu.matmul %9, %8, %cst {dimension_numbers = #tpu.dot_dimension_numbers<[1], [0], [0], [1], [0, 0, 1, 1], [], []>, precision = #tpu.contract_precision<fp32>} : vector<16x12xf32>, vector<12x62xf32>, vector<16x62xf32> -> vector<16x62xf32>
    %c0_10 = arith.constant 0 : index
    %c0_11 = arith.constant 0 : index
    %11 = vector.load %arg3[%c0_10, %c0_11] : memref<16x1xf32, #tpu.memory_space<vmem>>, vector<16x1xf32>
    %12 = vector.broadcast %11 : vector<16x1xf32> to vector<16x62xf32>
    %13 = arith.addf %10, %12 : vector<16x62xf32>
    %cst_12 = arith.constant 0.000000e+00 : f32
    %14 = vector.broadcast %cst_12 : f32 to vector<16x62xf32>
    %15 = arith.maximumf %13, %14 : vector<16x62xf32>
    %16 = tpu.iota {dimensions = array<i32: 0>} : vector<62x31xi32>
    %17 = tpu.iota {dimensions = array<i32: 1>} : vector<62x31xi32>
    %c2_i32 = arith.constant 2 : i32
    %18 = vector.broadcast %c2_i32 : i32 to vector<62x31xi32>
    %19 = arith.muli %18, %17 : vector<62x31xi32>
    %c0_i32 = arith.constant 0 : i32
    %20 = vector.broadcast %c0_i32 : i32 to vector<62x31xi32>
    %21 = arith.addi %19, %20 : vector<62x31xi32>
    %22 = arith.cmpi eq, %16, %21 : vector<62x31xi32>
    %23 = arith.extui %22 : vector<62x31xi1> to vector<62x31xi32>
    %24 = arith.sitofp %23 : vector<62x31xi32> to vector<62x31xf32>
    %cst_13 = arith.constant dense<0.000000e+00> : vector<16x31xf32>
    %25 = tpu.matmul %15, %24, %cst_13 {dimension_numbers = #tpu.dot_dimension_numbers<[1], [0], [0], [1], [0, 0, 1, 1], [], []>, precision = #tpu.contract_precision<fp32>} : vector<16x62xf32>, vector<62x31xf32>, vector<16x31xf32> -> vector<16x31xf32>
    %c2_i32_14 = arith.constant 2 : i32
    %26 = vector.broadcast %c2_i32_14 : i32 to vector<62x31xi32>
    %27 = arith.muli %26, %17 : vector<62x31xi32>
    %c1_i32 = arith.constant 1 : i32
    %28 = vector.broadcast %c1_i32 : i32 to vector<62x31xi32>
    %29 = arith.addi %27, %28 : vector<62x31xi32>
    %30 = arith.cmpi eq, %16, %29 : vector<62x31xi32>
    %31 = arith.extui %30 : vector<62x31xi1> to vector<62x31xi32>
    %32 = arith.sitofp %31 : vector<62x31xi32> to vector<62x31xf32>
    %cst_15 = arith.constant dense<0.000000e+00> : vector<16x31xf32>
    %33 = tpu.matmul %15, %32, %cst_15 {dimension_numbers = #tpu.dot_dimension_numbers<[1], [0], [0], [1], [0, 0, 1, 1], [], []>, precision = #tpu.contract_precision<fp32>} : vector<16x62xf32>, vector<62x31xf32>, vector<16x31xf32> -> vector<16x31xf32>
    %34 = arith.maximumf %25, %33 : vector<16x31xf32>
    %35 = vector.extract_strided_slice %34 {offsets = [0, 0], sizes = [16, 29], strides = [1, 1]} : vector<16x31xf32> to vector<16x29xf32>
    %c0_16 = arith.constant 0 : index
    %c0_17 = arith.constant 0 : index
    %36 = vector.load %arg11[%c0_16, %c0_17] : memref<48x62xf32, #tpu.memory_space<vmem>>, vector<16x29xf32>
    tpu.vector_store %arg11[%c0_16, %c0_17], %35 {strides = array<i32>} : memref<48x62xf32, #tpu.memory_space<vmem>>, vector<16x29xf32>,
    %37 = vector.extract_strided_slice %34 {offsets = [0, 1], sizes = [16, 29], strides = [1, 1]} : vector<16x31xf32> to vector<16x29xf32>
    %c16 = arith.constant 16 : index
    %c0_18 = arith.constant 0 : index
    %38 = vector.load %arg11[%c16, %c0_18] : memref<48x62xf32, #tpu.memory_space<vmem>>, vector<16x29xf32>
    tpu.vector_store %arg11[%c16, %c0_18], %37 {strides = array<i32>} : memref<48x62xf32, #tpu.memory_space<vmem>>, vector<16x29xf32>,
    %39 = vector.extract_strided_slice %34 {offsets = [0, 2], sizes = [16, 29], strides = [1, 1]} : vector<16x31xf32> to vector<16x29xf32>
    %c32 = arith.constant 32 : index
    %c0_19 = arith.constant 0 : index
    %40 = vector.load %arg11[%c32, %c0_19] : memref<48x62xf32, #tpu.memory_space<vmem>>, vector<16x29xf32>
    tpu.vector_store %arg11[%c32, %c0_19], %39 {strides = array<i32>} : memref<48x62xf32, #tpu.memory_space<vmem>>, vector<16x29xf32>,
    %c0_20 = arith.constant 0 : index
    %c0_21 = arith.constant 0 : index
    %41 = vector.load %arg11[%c0_20, %c0_21] : memref<48x62xf32, #tpu.memory_space<vmem>>, vector<48x29xf32>
    %c0_22 = arith.constant 0 : index
    %c0_23 = arith.constant 0 : index
    %42 = vector.load %arg4[%c0_22, %c0_23] : memref<16x48xf32, #tpu.memory_space<vmem>>, vector<16x48xf32>
    %cst_24 = arith.constant dense<0.000000e+00> : vector<16x29xf32>
    %43 = tpu.matmul %42, %41, %cst_24 {dimension_numbers = #tpu.dot_dimension_numbers<[1], [0], [0], [1], [0, 0, 1, 1], [], []>, precision = #tpu.contract_precision<fp32>} : vector<16x48xf32>, vector<48x29xf32>, vector<16x29xf32> -> vector<16x29xf32>
    %c0_25 = arith.constant 0 : index
    %c0_26 = arith.constant 0 : index
    %44 = vector.load %arg5[%c0_25, %c0_26] : memref<16x1xf32, #tpu.memory_space<vmem>>, vector<16x1xf32>
    %45 = vector.broadcast %44 : vector<16x1xf32> to vector<16x29xf32>
    %46 = arith.addf %43, %45 : vector<16x29xf32>
    %cst_27 = arith.constant 0.000000e+00 : f32
    %47 = vector.broadcast %cst_27 : f32 to vector<16x29xf32>
    %48 = arith.maximumf %46, %47 : vector<16x29xf32>
    %49 = vector.extract_strided_slice %48 {offsets = [0, 0], sizes = [16, 28], strides = [1, 1]} : vector<16x29xf32> to vector<16x28xf32>
    %50 = tpu.iota {dimensions = array<i32: 0>} : vector<28x14xi32>
    %51 = tpu.iota {dimensions = array<i32: 1>} : vector<28x14xi32>
    %c2_i32_28 = arith.constant 2 : i32
    %52 = vector.broadcast %c2_i32_28 : i32 to vector<28x14xi32>
    %53 = arith.muli %52, %51 : vector<28x14xi32>
    %c0_i32_29 = arith.constant 0 : i32
    %54 = vector.broadcast %c0_i32_29 : i32 to vector<28x14xi32>
    %55 = arith.addi %53, %54 : vector<28x14xi32>
    %56 = arith.cmpi eq, %50, %55 : vector<28x14xi32>
    %57 = arith.extui %56 : vector<28x14xi1> to vector<28x14xi32>
    %58 = arith.sitofp %57 : vector<28x14xi32> to vector<28x14xf32>
    %cst_30 = arith.constant dense<0.000000e+00> : vector<16x14xf32>
    %59 = tpu.matmul %49, %58, %cst_30 {dimension_numbers = #tpu.dot_dimension_numbers<[1], [0], [0], [1], [0, 0, 1, 1], [], []>, precision = #tpu.contract_precision<fp32>} : vector<16x28xf32>, vector<28x14xf32>, vector<16x14xf32> -> vector<16x14xf32>
    %c2_i32_31 = arith.constant 2 : i32
    %60 = vector.broadcast %c2_i32_31 : i32 to vector<28x14xi32>
    %61 = arith.muli %60, %51 : vector<28x14xi32>
    %c1_i32_32 = arith.constant 1 : i32
    %62 = vector.broadcast %c1_i32_32 : i32 to vector<28x14xi32>
    %63 = arith.addi %61, %62 : vector<28x14xi32>
    %64 = arith.cmpi eq, %50, %63 : vector<28x14xi32>
    %65 = arith.extui %64 : vector<28x14xi1> to vector<28x14xi32>
    %66 = arith.sitofp %65 : vector<28x14xi32> to vector<28x14xf32>
    %cst_33 = arith.constant dense<0.000000e+00> : vector<16x14xf32>
    %67 = tpu.matmul %49, %66, %cst_33 {dimension_numbers = #tpu.dot_dimension_numbers<[1], [0], [0], [1], [0, 0, 1, 1], [], []>, precision = #tpu.contract_precision<fp32>} : vector<16x28xf32>, vector<28x14xf32>, vector<16x14xf32> -> vector<16x14xf32>
    %68 = arith.maximumf %59, %67 : vector<16x14xf32>
    %69 = vector.extract_strided_slice %68 {offsets = [0, 0], sizes = [16, 12], strides = [1, 1]} : vector<16x14xf32> to vector<16x12xf32>
    %c0_34 = arith.constant 0 : index
    %c0_35 = arith.constant 0 : index
    %70 = vector.load %arg11[%c0_34, %c0_35] : memref<48x62xf32, #tpu.memory_space<vmem>>, vector<16x12xf32>
    tpu.vector_store %arg11[%c0_34, %c0_35], %69 {strides = array<i32>} : memref<48x62xf32, #tpu.memory_space<vmem>>, vector<16x12xf32>,
    %71 = vector.extract_strided_slice %68 {offsets = [0, 1], sizes = [16, 12], strides = [1, 1]} : vector<16x14xf32> to vector<16x12xf32>
    %c16_36 = arith.constant 16 : index
    %c0_37 = arith.constant 0 : index
    %72 = vector.load %arg11[%c16_36, %c0_37] : memref<48x62xf32, #tpu.memory_space<vmem>>, vector<16x12xf32>
    tpu.vector_store %arg11[%c16_36, %c0_37], %71 {strides = array<i32>} : memref<48x62xf32, #tpu.memory_space<vmem>>, vector<16x12xf32>,
    %73 = vector.extract_strided_slice %68 {offsets = [0, 2], sizes = [16, 12], strides = [1, 1]} : vector<16x14xf32> to vector<16x12xf32>
    %c32_38 = arith.constant 32 : index
    %c0_39 = arith.constant 0 : index
    %74 = vector.load %arg11[%c32_38, %c0_39] : memref<48x62xf32, #tpu.memory_space<vmem>>, vector<16x12xf32>
    tpu.vector_store %arg11[%c32_38, %c0_39], %73 {strides = array<i32>} : memref<48x62xf32, #tpu.memory_space<vmem>>, vector<16x12xf32>,
    %c0_40 = arith.constant 0 : index
    %c0_41 = arith.constant 0 : index
    %75 = vector.load %arg11[%c0_40, %c0_41] : memref<48x62xf32, #tpu.memory_space<vmem>>, vector<48x12xf32>
    %c0_42 = arith.constant 0 : index
    %c0_43 = arith.constant 0 : index
    %76 = vector.load %arg6[%c0_42, %c0_43] : memref<8x48xf32, #tpu.memory_space<vmem>>, vector<8x48xf32>
    %cst_44 = arith.constant dense<0.000000e+00> : vector<8x12xf32>
    %77 = tpu.matmul %76, %75, %cst_44 {dimension_numbers = #tpu.dot_dimension_numbers<[1], [0], [0], [1], [0, 0, 1, 1], [], []>, precision = #tpu.contract_precision<fp32>} : vector<8x48xf32>, vector<48x12xf32>, vector<8x12xf32> -> vector<8x12xf32>
    %c0_45 = arith.constant 0 : index
    %c0_46 = arith.constant 0 : index
    %78 = vector.load %arg7[%c0_45, %c0_46] : memref<8x1xf32, #tpu.memory_space<vmem>>, vector<8x1xf32>
    %79 = vector.broadcast %78 : vector<8x1xf32> to vector<8x12xf32>
    %80 = arith.addf %77, %79 : vector<8x12xf32>
    %cst_47 = arith.constant 0.000000e+00 : f32
    %81 = vector.broadcast %cst_47 : f32 to vector<8x12xf32>
    %82 = arith.maximumf %80, %81 : vector<8x12xf32>
    %83 = vector.extract_strided_slice %82 {offsets = [0, 0], sizes = [1, 12], strides = [1, 1]} : vector<8x12xf32> to vector<1x12xf32>
    %c0_48 = arith.constant 0 : index
    %c0_49 = arith.constant 0 : index
    %84 = vector.load %arg12[%c0_48, %c0_49] : memref<1x96xf32, #tpu.memory_space<vmem>>, vector<1x12xf32>
    tpu.vector_store %arg12[%c0_48, %c0_49], %83 {strides = array<i32>} : memref<1x96xf32, #tpu.memory_space<vmem>>, vector<1x12xf32>,
    %85 = vector.extract_strided_slice %82 {offsets = [1, 0], sizes = [1, 12], strides = [1, 1]} : vector<8x12xf32> to vector<1x12xf32>
    %c0_50 = arith.constant 0 : index
    %c12 = arith.constant 12 : index
    %86 = vector.load %arg12[%c0_50, %c12] : memref<1x96xf32, #tpu.memory_space<vmem>>, vector<1x12xf32>
    tpu.vector_store %arg12[%c0_50, %c12], %85 {strides = array<i32>} : memref<1x96xf32, #tpu.memory_space<vmem>>, vector<1x12xf32>,
    %87 = vector.extract_strided_slice %82 {offsets = [2, 0], sizes = [1, 12], strides = [1, 1]} : vector<8x12xf32> to vector<1x12xf32>
    %c0_51 = arith.constant 0 : index
    %c24 = arith.constant 24 : index
    %88 = vector.load %arg12[%c0_51, %c24] : memref<1x96xf32, #tpu.memory_space<vmem>>, vector<1x12xf32>
    tpu.vector_store %arg12[%c0_51, %c24], %87 {strides = array<i32>} : memref<1x96xf32, #tpu.memory_space<vmem>>, vector<1x12xf32>,
    %89 = vector.extract_strided_slice %82 {offsets = [3, 0], sizes = [1, 12], strides = [1, 1]} : vector<8x12xf32> to vector<1x12xf32>
    %c0_52 = arith.constant 0 : index
    %c36 = arith.constant 36 : index
    %90 = vector.load %arg12[%c0_52, %c36] : memref<1x96xf32, #tpu.memory_space<vmem>>, vector<1x12xf32>
    tpu.vector_store %arg12[%c0_52, %c36], %89 {strides = array<i32>} : memref<1x96xf32, #tpu.memory_space<vmem>>, vector<1x12xf32>,
    %91 = vector.extract_strided_slice %82 {offsets = [4, 0], sizes = [1, 12], strides = [1, 1]} : vector<8x12xf32> to vector<1x12xf32>
    %c0_53 = arith.constant 0 : index
    %c48 = arith.constant 48 : index
    %92 = vector.load %arg12[%c0_53, %c48] : memref<1x96xf32, #tpu.memory_space<vmem>>, vector<1x12xf32>
    tpu.vector_store %arg12[%c0_53, %c48], %91 {strides = array<i32>} : memref<1x96xf32, #tpu.memory_space<vmem>>, vector<1x12xf32>,
    %93 = vector.extract_strided_slice %82 {offsets = [5, 0], sizes = [1, 12], strides = [1, 1]} : vector<8x12xf32> to vector<1x12xf32>
    %c0_54 = arith.constant 0 : index
    %c60 = arith.constant 60 : index
    %94 = vector.load %arg12[%c0_54, %c60] : memref<1x96xf32, #tpu.memory_space<vmem>>, vector<1x12xf32>
    tpu.vector_store %arg12[%c0_54, %c60], %93 {strides = array<i32>} : memref<1x96xf32, #tpu.memory_space<vmem>>, vector<1x12xf32>,
    %95 = vector.extract_strided_slice %82 {offsets = [6, 0], sizes = [1, 12], strides = [1, 1]} : vector<8x12xf32> to vector<1x12xf32>
    %c0_55 = arith.constant 0 : index
    %c72 = arith.constant 72 : index
    %96 = vector.load %arg12[%c0_55, %c72] : memref<1x96xf32, #tpu.memory_space<vmem>>, vector<1x12xf32>
    tpu.vector_store %arg12[%c0_55, %c72], %95 {strides = array<i32>} : memref<1x96xf32, #tpu.memory_space<vmem>>, vector<1x12xf32>,
    %97 = vector.extract_strided_slice %82 {offsets = [7, 0], sizes = [1, 12], strides = [1, 1]} : vector<8x12xf32> to vector<1x12xf32>
    %c0_56 = arith.constant 0 : index
    %c84 = arith.constant 84 : index
    %98 = vector.load %arg12[%c0_56, %c84] : memref<1x96xf32, #tpu.memory_space<vmem>>, vector<1x12xf32>
    tpu.vector_store %arg12[%c0_56, %c84], %97 {strides = array<i32>} : memref<1x96xf32, #tpu.memory_space<vmem>>, vector<1x12xf32>,
    %c0_57 = arith.constant 0 : index
    %c0_58 = arith.constant 0 : index
    %99 = vector.load %arg12[%c0_57, %c0_58] : memref<1x96xf32, #tpu.memory_space<vmem>>, vector<1x96xf32>
    %c0_59 = arith.constant 0 : index
    %c0_60 = arith.constant 0 : index
    %100 = vector.load %arg8[%c0_59, %c0_60] : memref<5x96xf32, #tpu.memory_space<vmem>>, vector<5x96xf32>
    %cst_61 = arith.constant dense<0.000000e+00> : vector<1x5xf32>
    %101 = tpu.matmul %99, %100, %cst_61 {dimension_numbers = #tpu.dot_dimension_numbers<[1], [1], [0], [0], [0, 0, 1, 0], [], []>, precision = #tpu.contract_precision<fp32>} : vector<1x96xf32>, vector<5x96xf32>, vector<1x5xf32> -> vector<1x5xf32>
    %c0_62 = arith.constant 0 : index
    %c0_63 = arith.constant 0 : index
    %102 = vector.load %arg9[%c0_62, %c0_63] : memref<1x5xf32, #tpu.memory_space<vmem>>, vector<1x5xf32>
    %103 = arith.addf %101, %102 : vector<1x5xf32>
    %c0_64 = arith.constant 0 : index
    %c0_65 = arith.constant 0 : index
    %c0_66 = arith.constant 0 : index
    %104 = vector.load %arg10[%c0_64, %c0_65, %c0_66] : memref<1x1x5xf32, #tpu.memory_space<vmem>>, vector<1x1x5xf32>
    %105 = vector.shape_cast %104 : vector<1x1x5xf32> to vector<1x5xf32>
    %106 = vector.shape_cast %103 : vector<1x5xf32> to vector<1x1x5xf32>
    tpu.vector_store %arg10[%c0_64, %c0_65, %c0_66], %106 {strides = array<i32>} : memref<1x1x5xf32, #tpu.memory_space<vmem>>, vector<1x1x5xf32>,
    return
  }
  func.func @transform_0(%arg0: i32) -> (i32, i32, i32) {
    %c0_i32 = arith.constant 0 : i32
    %c0_i32_0 = arith.constant 0 : i32
    %c0_i32_1 = arith.constant 0 : i32
    return %arg0, %c0_i32, %c0_i32_0 : i32, i32, i32
  }
  func.func @transform_1(%arg0: i32) -> (i32, i32) {
    %c0_i32 = arith.constant 0 : i32
    %c0_i32_0 = arith.constant 0 : i32
    %c0_i32_1 = arith.constant 0 : i32
    return %c0_i32, %c0_i32_0 : i32, i32
  }
  func.func @transform_2(%arg0: i32) -> (i32, i32) {
    %c0_i32 = arith.constant 0 : i32
    %c0_i32_0 = arith.constant 0 : i32
    %c0_i32_1 = arith.constant 0 : i32
    return %c0_i32, %c0_i32_0 : i32, i32
  }
  func.func @transform_3(%arg0: i32) -> (i32, i32) {
    %c0_i32 = arith.constant 0 : i32
    %c0_i32_0 = arith.constant 0 : i32
    %c0_i32_1 = arith.constant 0 : i32
    return %c0_i32, %c0_i32_0 : i32, i32
  }
  func.func @transform_4(%arg0: i32) -> (i32, i32) {
    %c0_i32 = arith.constant 0 : i32
    %c0_i32_0 = arith.constant 0 : i32
    %c0_i32_1 = arith.constant 0 : i32
    return %c0_i32, %c0_i32_0 : i32, i32
  }
  func.func @transform_5(%arg0: i32) -> (i32, i32) {
    %c0_i32 = arith.constant 0 : i32
    %c0_i32_0 = arith.constant 0 : i32
    %c0_i32_1 = arith.constant 0 : i32
    return %c0_i32, %c0_i32_0 : i32, i32
  }
  func.func @transform_6(%arg0: i32) -> (i32, i32) {
    %c0_i32 = arith.constant 0 : i32
    %c0_i32_0 = arith.constant 0 : i32
    %c0_i32_1 = arith.constant 0 : i32
    return %c0_i32, %c0_i32_0 : i32, i32
  }
  func.func @transform_7(%arg0: i32) -> (i32, i32) {
    %c0_i32 = arith.constant 0 : i32
    %c0_i32_0 = arith.constant 0 : i32
    %c0_i32_1 = arith.constant 0 : i32
    return %c0_i32, %c0_i32_0 : i32, i32
  }
  func.func @transform_8(%arg0: i32) -> (i32, i32) {
    %c0_i32 = arith.constant 0 : i32
    %c0_i32_0 = arith.constant 0 : i32
    %c0_i32_1 = arith.constant 0 : i32
    return %c0_i32, %c0_i32_0 : i32, i32
  }
  func.func @transform_9(%arg0: i32) -> (i32, i32, i32) {
    %c0_i32 = arith.constant 0 : i32
    %c0_i32_0 = arith.constant 0 : i32
    %c0_i32_1 = arith.constant 0 : i32
    return %arg0, %c0_i32, %c0_i32_0 : i32, i32, i32
  }
}

</mosaic_0001>

<bundles_post_ra>
// kernel: galspecnet_forward.1
= control target key start
LH: loop header
LB: loop body
LE: loop exit
PB: predicated region body
PF: predicated region fallthrough
CT: control target
= control target key end

     0   :  { %14 = vsyncpa [#allocation5], 0  ;;  %s7596_s0 = inlined_call_operand.vmem [shape: f32[2,4,64], index: 0, kind: input, shape index: {}]   ;;  %s7597_s1 = inlined_call_operand.vmem [shape: f32[16,12], index: 1, kind: input, shape index: {}]   ;;  %s7598_s2 = inlined_call_operand.vmem [shape: f32[16,1], index: 2, kind: input, shape index: {}]   ;;  %s7599_s3 = inlined_call_operand.vmem [shape: f32[16,48], index: 3, kind: input, shape index: {}]   ;;  %s7600_s4 = inlined_call_operand.vmem [shape: f32[16,1], index: 4, kind: input, shape index: {}]   ;;  %s7601_s5 = inlined_call_operand.vmem [shape: f32[8,48], index: 5, kind: input, shape index: {}]   ;;  %s7602_s6 = inlined_call_operand.vmem [shape: f32[8,1], index: 6, kind: input, shape index: {}]   ;;  %s7603_s7 = inlined_call_operand.vmem [shape: f32[5,96], index: 7, kind: input, shape index: {}]   ;;  %s7604_s8 = inlined_call_operand.vmem [shape: f32[1,5], index: 8, kind: input, shape index: {}]   ;;  %s7605_s9 = inlined_call_operand.hbm [shape: f32[2,1,5], index: 9, kind: output, shape index: {}]  }
   0x1   :  { %16 = vsyncpa [#allocation5 + $0x1], 0  ;;  %s6654_s30 = smov 0   ;;  %s6656_s10 = smov 0  }
   0x2   :  { %s6658_s11 = smov 0   ;;  %s6660_s12 = smov 0  }
   0x3 LB: > { %s6675_s13 = sadd.s32 4294967295, %s6586_s12   ;;  %s4894_s14 = sadd.s32 4294967294, %s6586_s12   ;;  %s6586_s12 = sphi %s6660_s12, %s7650_s12   ;;  %s6582_s11 = sphi %s6658_s11, %s7649_s11   ;;  %s6578_s10 = sphi %s6656_s10, %s7648_s10   ;;  %s6574_s30 = sphi %s6654_s30, %s7647_s30  }
   0x4   : > { %s6679_s15 = sadd.s32 1, %s6586_s12   ;;  %s223_s16 = sadd.s32 1, %s6582_s11 }
   0x5   : > { %s220_s17 = ssub.s32 %s6586_s12, %s6679_s15  ;;  %p233_p0 = scmp.ne.s32.totalorder %s6582_s11, %s6578_s10 }
   0x6   : > { %p221_p1 = scmp.eq.s32.totalorder %s220_s17, 0  ;;  %p234_p2 = scmp.eq.s32.totalorder %s6675_s13, 1 }
   0x7   : > { %p239_p3 = scmp.ne.s32.totalorder %s6578_s10, %s6574_s30  ;;  %p240_p4 = scmp.eq.s32.totalorder %s4894_s14, 1 }
   0x8   : > { %s6690_s18 = scalar_select %p221_p1, %s6582_s11, %s223_s16  }
   0x9   : > { %p6692_p5 = por %p234_p2, %p233_p0  ;;  %p6696_p6 = por %p240_p4, %p239_p3 }
   0xa   : > { %p4897_p7 = scmp.ge.s32.totalorder %s6586_s12, 1  ;;  %p289_p8 = scmp.lt.s32.totalorder %s6586_s12, 3 }
   0xc   : > { %p290_p9 = pnand %p4897_p7, %p289_p8 }
   0xd   : > { %p323_p10 = scmp.lt.s32.totalorder (!%p290_p9), %s6675_s13, 1  ;;  %v341_v0 = vld [vmem:[%s7597_s1] sm:$0xff] (!%p290_p9)  ;;  %vm7606_vm0 = vcmask (!%p290_p9), 97280   ;;  %vm328_vm1 = vcmask (!%p290_p9), 502784   ;;  %s6588_s28 = smov (!%p290_p9), 126   ;;  %v6590_v9 = vmov (!%p290_p9), 0   ;;  %v870_v37 = vlaneseq (!%p290_p9) }
   0xe   : > { %293 = sbr.rel (%p290_p9) target bundleno = 2277 (0x8e5), region = 56  ;;  %v357_v1 = vsel (!%p290_p9), %vm7606_vm0, %v341_v0, 0  ;;  %s6589_s29 = smov (!%p290_p9), 127   ;;  %v343_v8 = vld [vmem:[%s7598_s2] sm:$0xff] (!%p290_p9)  ;;  %6522 = vset.pattern.permute.xlu1 (!%p290_p9), %v6590_v9  ;;  %6523 = vset.pattern.permute.xlu0 (!%p290_p9), %v6590_v9  ;;  %v344_v10 = vld [vmem:[%s7598_s2 + $0x8] sm:$0xff] (!%p290_p9)  ;;  %vm7607_vm2 = vcmask (!%p290_p9), 1043456  }
   0xf   : > { %v6708_v2 = vand.u32 (!%p290_p9), 4294901760, %v357_v1  ;;  %347 = vperm.xlu1 (!%p290_p9), %6522, %v343_v8   ;;  %v342_v11 = vld [vmem:[%s7597_s1 + $0x8] sm:$0xff] (!%p290_p9)  ;;  %v880_v38 = vand.u32 (!%p290_p9), 127, %v870_v37  ;;  %v871_v39 = vshrl.u32 (!%p290_p9), %v870_v37, 7  ;;  %v6591_v44 = vmov (!%p290_p9), 1.0|1.0  }
  0x10   : > { %v360_v12 = vsel (!%p290_p9), %vm7606_vm0, %v342_v11, 0  ;;  %v6592_v54 = vmov (!%p290_p9), 0.0   ;;  %v6593_v9 = vmov (!%p290_p9), 1.0   ;;  %v2134_v53 = vld [vmem:[%s7599_s3] sm:$0xff] (!%p290_p9)  ;;  %s6597_s25 = smov (!%p290_p9), 12   ;;  %s6598_s26 = smov (!%p290_p9), 48  }
  0x11   : > { %v434_v3 = vsub.f32 (!%p290_p9), %v357_v1, %v6708_v2  ;;  %v443_v14 = vand.u32 (!%p290_p9), 4294901760, %v360_v12  ;;  %v6733_v40 = vmul.u32 (!%p290_p9), 2, %v880_v38  ;;  %v872_v41 = vadd.s32 (!%p290_p9), 8, %v871_v39  ;;  %s6600_s17 = smov (!%p290_p9), 72   ;;  %s6601_s21 = smov (!%p290_p9), 60  }
  0x12   : > { %v6761_v46 = vadd.s32 (!%p290_p9), 16, %v871_v39  ;;  %v6763_v47 = vadd.s32 (!%p290_p9), 24, %v871_v39  ;;  %v875_v50 = vadd.s32 (!%p290_p9), 32, %v871_v39  ;;  %v876_v51 = vadd.s32 (!%p290_p9), 40, %v871_v39  ;;  %s6602_s22 = smov (!%p290_p9), 84  }
  0x13   : > { %v435_v5 = vand.u32 (!%p290_p9), 4294901760, %v434_v3  ;;  %352 = vperm.xlu1 (!%p290_p9), %6522, %v344_v10   ;;  %v444_v16 = vsub.f32 (!%p290_p9), %v360_v12, %v443_v14  ;;  %v6736_v42 = vadd.s32 (!%p290_p9), 1, %v6733_v40  ;;  %vm882_vm3 = vcmp.eq.s32.totalorder (!%p290_p9), %v871_v39, %v6733_v40 }
  0x14   : > { %vm883_vm4 = vcmp.eq.s32.totalorder (!%p290_p9), %v872_v41, %v6733_v40  ;;  %vm884_vm9 = vcmp.eq.s32.totalorder (!%p290_p9), %v6761_v46, %v6733_v40  ;;  %vm7610_vm10 = vcmp.eq.s32.totalorder (!%p290_p9), %v6763_v47, %v6733_v40  ;;  %vm886_vm15 = vcmp.eq.s32.totalorder (!%p290_p9), %v875_v50, %v6733_v40 }
  0x15   : > { %s324_s23 = scalar_select %p323_p10, %s6675_s13, 1  ;;  %v436_v6 = vsub.f32 %v434_v3, %v435_v5  ;;  %v445_v19 = vand.u32 4294901760, %v444_v16  ;;  %vm1498_vm5 = vcmp.eq.s32.totalorder %v871_v39, %v6736_v42  ;;  %vm1499_vm6 = vcmp.eq.s32.totalorder %v872_v41, %v6736_v42  ;;  %vm6746_vm7 = vmpackc.low %vm883_vm4, %vm882_vm3 }
  0x16   : > { %5945 = vmatprep.subr.msk.bf16.mxu1 %vm6746_vm7, %v6591_v44  ;;  %vm6757_vm8 = vmpackc.low %vm1499_vm6, %vm1498_vm5  ;;  %vm7609_vm11 = vcmp.eq.s32.totalorder %v6761_v46, %v6736_v42  ;;  %vm7608_vm12 = vcmp.eq.s32.totalorder %v6763_v47, %v6736_v42  ;;  %vm1502_vm0 = vcmp.eq.s32.totalorder %v875_v50, %v6736_v42  ;;  %v4899_v55 = vsel %vm882_vm3, 1.0, %v6592_v54 }
  0x17   : > { %s4898_s24 = sshll.u32 %s324_s23, 2  ;;  %v437_v7 = vand.u32 4294901760, %v436_v6  ;;  %v446_v24 = vsub.f32 %v444_v16, %v445_v19  ;;  %5947 = vmatpush3.bf16.msk.msra.mxu1 %vm6746_vm7, %v6591_v44  ;;  %vm6788_vm13 = vmpackc.low %vm7610_vm10, %vm884_vm9  ;;  %v4900_v56 = vsel %vm883_vm4, 1.0, %v6592_v54  ;;  %v4931_v57 = vsel %vm1498_vm5, 1.0, %v6592_v54  ;;  %s321_s23 = sand.u32 1, %s6578_s10  }
  0x18   : > { %s326_s27 = scalar_lea.vmem %s7596_s0, %s4898_s24  ;;  %5949 = vmatprep.subr.msk.bf16.mxu1 %vm6788_vm13, %v6591_v44  ;;  %vm6801_vm14 = vmpackc.low %vm7608_vm12, %vm7609_vm11  ;;  %v4932_v58 = vsel %vm1499_vm6, 1.0, %v6592_v54  ;;  %v4903_v59 = vsel %vm886_vm15, 1.0, %v6592_v54  ;;  %v877_v60 = vadd.s32 48, %v871_v39  ;;  %v878_v61 = vadd.s32 56, %v871_v39  ;;  %s6596_s24 = smov 24  }
  0x19   : > { %v327_v4 = vld [vmem:[%s326_s27] sm:$0xf]  ;;  %5312 = vmatprep.mubr.f32.mxu0 %v437_v7  ;;  %v447_v28 = vand.u32 4294901760, %v446_v24  ;;  %vm913_vm3 = vcmask 1045504   ;;  %v6857_v62 = vsub.f32 %v4899_v55, %v4899_v55  ;;  %v6859_v63 = vsub.f32 %v4900_v56, %v4900_v56  ;;  %s6599_s27 = smov 36  }
  0x1a   : > { %335 = vrot.lane.b32.xlu0 %v327_v4, %s6588_s28  ;;  %329 = vst.msk [vmem:[#allocation2] sm:$0xf] %vm328_vm1, %v327_v4  ;;  %v6861_v0 = vsub.f32 %v4931_v57, %v4931_v57  ;;  %v6863_v1 = vsub.f32 %v4932_v58, %v4932_v58  ;;  %vm888_vm4 = vcmp.eq.s32.totalorder %v877_v60, %v6733_v40  ;;  %v4935_v7 = vsel %vm1502_vm0, 1.0, %v6592_v54 }
  0x1b   : > { %5951 = vmatpush3.bf16.msk.msra.mxu1 %vm6788_vm13, %v6591_v44  ;;  %vm889_vm5 = vcmp.eq.s32.totalorder %v878_v61, %v6733_v40  ;;  %vm1504_vm6 = vcmp.eq.s32.totalorder %v877_v60, %v6736_v42  ;;  %vm1505_vm10 = vcmp.eq.s32.totalorder %v878_v61, %v6736_v42 }
  0x1c   : > { %v4938_v6 = vsel %vm1505_vm10, 1.0, %v6592_v54  ;;  %vm7631_vm10 = vcmp.eq.s32.totalorder %v6763_v47, %v6736_v42 }
  0x1d   : > { %v6893_v11 = vpack.c.bf16 %v4938_v6, %v6593_v9 }
  0x1e   : > { %331 = vrot.lane.b32.xlu0 %v327_v4, %s6589_s29  ;;  %v4906_v4 = vsel %vm889_vm5, 1.0, %v6592_v54 }
  0x1f   : > { %v6890_v10 = vpack.c.bf16 %v4906_v4, %v6593_v9  ;;  %v915_v50 = vsel %vm913_vm3, %v4906_v4, 0 }
  0x20   : > { %v1061_v58 = vsub.f32 %v915_v50, %v915_v50 }
  0x8c   : > { %v336_v13 = vpop.permute.xlu0 %335 }
  0x8d   : > { %338 = vst.msk [vmem:[#allocation2 + $0x8] sm:$0xf] %vm328_vm1, %v336_v13  ;;  %v1013_v13 = vand.u32 4294901760, %v6857_v62 }
  0x90   : > { %v332_v15 = vpop.permute.xlu0 %331 }
  0x91   : > { %334 = vst.msk [vmem:[#allocation2 + $0x4] sm:$0xf] %vm328_vm1, %v332_v15  ;;  %vm887_vm1 = vcmp.eq.s32.totalorder %v876_v51, %v6733_v40  ;;  %v1621_v15 = vand.u32 4294901760, %v6861_v0 }
  0x92   : > { %vm6820_vm12 = vmpackc.low %vm887_vm1, %vm886_vm15 }
  0x93   : > { %5953 = vmatprep.subr.msk.bf16.mxu1 %vm6820_vm12, %v6591_v44  ;;  %vm6878_vm15 = vmpackc.low %vm913_vm3, %vm888_vm4 }
  0x94   : > { %v340_v17 = vld [vmem:[#allocation2 + $0x8] sm:$0xf]  ;;  %5955 = vmatpush3.bf16.msk.msra.mxu1 %vm6820_vm12, %v6591_v44 }
  0x95   : > { %v364_v18 = vsel %vm7607_vm2, %v340_v17, 0  ;;  %vm1503_vm2 = vcmp.eq.s32.totalorder %v876_v51, %v6736_v42  ;;  %5958 = vmatprep.subr.msk.bf16.mxu1 %vm6878_vm15, %v6890_v10 }
  0x96   : > { %v370_v20 = vand.u32 4294901760, %v364_v18  ;;  %vm6831_vm11 = vmpackc.low %vm1503_vm2, %vm1502_vm0  ;;  %v4936_v8 = vsel %vm1503_vm2, 1.0, %v6592_v54  ;;  %vm7629_vm0 = vcmp.eq.s32.totalorder %v6763_v47, %v6733_v40  ;;  %vm7630_vm2 = vcmp.eq.s32.totalorder %v6761_v46, %v6736_v42 }
  0x97   : > { %v1655_v24 = vsub.f32 %v4936_v8, %v4936_v8 }
  0x98   : > { %v339_v21 = vld [vmem:[#allocation2] sm:$0xff]  ;;  %v462_v22 = vsub.f32 %v364_v18, %v370_v20  ;;  %v4905_v18 = vsel %vm888_vm4, 1.0, %v6592_v54  ;;  %5961 = vmatpush3.bf16.msk.msra.mxu1 %vm6878_vm15, %v6890_v10 }
  0x99   : > { %v367_v23 = vand.u32 4294901760, %v339_v21  ;;  %v1656_v38 = vand.u32 4294901760, %v1655_v24 }
  0x9a   : > { %v463_v25 = vand.u32 4294901760, %v462_v22 }
  0x9b   : > { %v5920_v26 = vpack.c.bf16 %v370_v20, %v367_v23  ;;  %v455_v27 = vsub.f32 %v339_v21, %v367_v23  ;;  %v1622_v21 = vsub.f32 %v6861_v0, %v1621_v15  ;;  %v1648_v23 = vsub.f32 %v4935_v7, %v4935_v7 }
  0x9c   : > { %v464_v30 = vsub.f32 %v462_v22, %v463_v25  ;;  %v1657_v55 = vsub.f32 %v1655_v24, %v1656_v38 }
  0x9d   : > { %5921 = vmatprep.subr.bf16.mxu0 %v5920_v26  ;;  %v456_v29 = vand.u32 4294901760, %v455_v27  ;;  %v5928_v35 = vpack.c.bf16 %v462_v22, %v455_v27  ;;  %v1649_v37 = vand.u32 4294901760, %v1648_v23 }
  0x9e   : > { %5923 = vmatpush3.bf16.msra.mxu0 %v5920_v26  ;;  %v465_v33 = vand.u32 4294901760, %v464_v30  ;;  %v1054_v30 = vsub.f32 %v4905_v18, %v4905_v18  ;;  %v1658_v61 = vand.u32 4294901760, %v1657_v55  ;;  %v1062_v18 = vand.u32 4294901760, %v1061_v58 }
  0x9f   : > { %v457_v31 = vsub.f32 %v455_v27, %v456_v29  ;;  %v5936_v36 = vpack.c.bf16 %v463_v25, %v456_v29  ;;  %v1623_v29 = vand.u32 4294901760, %v1622_v21  ;;  %v1650_v51 = vsub.f32 %v1648_v23, %v1649_v37 }
  0xa0   : > { %v1055_v56 = vand.u32 4294901760, %v1054_v30  ;;  %v6972_v55 = vpack.c.bf16 %v1061_v58, %v1054_v30 }
  0xa1   : > { %5313 = vmatmul.mubr.f32.vlgmr.msra.gmra.mrb[0].mxu0 %v447_v28  ;;  %v458_v32 = vand.u32 4294901760, %v457_v31  ;;  %v1651_v60 = vand.u32 4294901760, %v1650_v51  ;;  %v6970_v51 = vpack.c.bf16 %v1655_v24, %v1648_v23 }
  0xa2   : > { %5319 = vmatprep.mubr.f32.mxu0 %v6708_v2  ;;  %v6992_v23 = vpack.c.bf16 %v1062_v18, %v1055_v56 }
  0xa3   : > { %v5924_v34 = vpack.c.bf16 %v465_v33, %v458_v32 }
  0xa5   : > { %5925 = vmatprep.subr.bf16.mxu0 %v5924_v34 }
  0xa6   : > { %5927 = vmatpush3.bf16.msra.mxu0 %v5924_v34 }
  0xa7   : > { %5929 = vmatprep.subr.bf16.mxu0 %v5928_v35 }
  0xa9   : > { %5320 = vmatmul.mubr.f32.vlgmr.msra.gmra.mrb[0].mxu0 %v443_v14 }
  0xaa   : > { %5931 = vmatpush3.bf16.msra.mxu0 %v5928_v35  ;;  %5326 = vmatprep.mubr.f32.mxu0 %v434_v3  ;;  %v6872_v3 = vsub.f32 %v4903_v59, %v4903_v59  ;;  %v1523_v59 = vsel %vm913_vm3, %v4938_v6, 0  ;;  %v6960_v6 = vpack.c.bf16 %v6863_v1, %v6861_v0  ;;  %v4933_v0 = vsel %vm7630_vm2, 1.0, %v6592_v54 }
  0xab   : > { %5933 = vmatprep.subr.bf16.mxu0 %v5920_v26 }
  0xac   : > { %v1041_v22 = vand.u32 4294901760, %v6872_v3 }
  0xae   : > { %v1042_v33 = vsub.f32 %v6872_v3, %v1041_v22 }
  0xb0   : > { %v1043_v39 = vand.u32 4294901760, %v1042_v33 }
  0xb1   : > { %5327 = vmatmul.mubr.f32.vlgmr.msra.gmra.mrb[0].mxu0 %v444_v16  ;;  %v1628_v16 = vand.u32 4294901760, %v6863_v1 }
  0xb2   : > { %5935 = vmatpush3.bf16.msra.mxu0 %v5920_v26  ;;  %5333 = vmatprep.mubr.f32.mxu0 %v435_v5 }
  0xb3   : > { %5937 = vmatprep.subr.bf16.mxu0 %v5936_v36  ;;  %v1629_v25 = vsub.f32 %v6863_v1, %v1628_v16  ;;  %v7014_v1 = vsel %vm7631_vm10, 1.0, %v6592_v54 }
  0xb5   : > { %v1630_v31 = vand.u32 4294901760, %v1629_v25  ;;  %v1063_v25 = vsub.f32 %v1061_v58, %v1062_v18 }
  0xb9   : > { %5334 = vmatmul.mubr.f32.vlgmr.msra.gmra.mrb[0].mxu0 %v445_v19  ;;  %v1014_v19 = vsub.f32 %v6857_v62, %v1013_v13 }
  0xba   : > { %5939 = vmatpush3.bf16.msra.mxu0 %v5936_v36  ;;  %5340 = vmatprep.mubr.f32.mxu0 %v6708_v2  ;;  %v6943_v36 = vpack.c.bf16 %v1630_v31, %v1623_v29 }
  0xbb   : > { %5941 = vmatprep.subr.bf16.mxu0 %v5920_v26  ;;  %v1015_v27 = vand.u32 4294901760, %v1014_v19  ;;  %v1669_v19 = vsub.f32 %v1523_v59, %v1523_v59 }
  0xc1   : > { %5341 = vmatmul.mubr.f32.vlgmr.msra.gmra.mrb[0].mxu0 %v443_v14 }
  0xc2   : > { %5943 = vmatpush3.bf16.msra.mxu0 %v5920_v26  ;;  %5347 = vmatprep.mubr.f32.mxu0 %v6708_v2  ;;  %v4904_v2 = vsel %vm887_vm1, 1.0, %v6592_v54  ;;  %vm6898_vm1 = vmpackc.low %vm913_vm3, %vm1504_vm6  ;;  %v4937_v26 = vsel %vm1504_vm6, 1.0, %v6592_v54  ;;  %vm906_vm3 = vcmask 506880  }
  0xc3   : > { %6047 = vmatprep.subr.msk.bf16.mxu0 %vm6757_vm8, %v6591_v44  ;;  %v6906_v17 = vsub.f32 %v4904_v2, %v4904_v2  ;;  %v1662_v35 = vsub.f32 %v4937_v26, %v4937_v26  ;;  %v1056_v2 = vsub.f32 %v1054_v30, %v1055_v56  ;;  %v1670_v26 = vand.u32 4294901760, %v1669_v19  ;;  %v348_v30 = vpop.permute.xlu1 %347 }
  0xc5   : > { %v1048_v34 = vand.u32 4294901760, %v6906_v17  ;;  %v1663_v7 = vand.u32 4294901760, %v1662_v35  ;;  %v1057_v4 = vand.u32 4294901760, %v1056_v2  ;;  %v1671_v31 = vsub.f32 %v1669_v19, %v1670_v26 }
  0xc6   : > { %v6968_v50 = vpack.c.bf16 %v6906_v17, %v6872_v3 }
  0xc7   : > { %v1049_v41 = vsub.f32 %v6906_v17, %v1048_v34  ;;  %v1664_v21 = vsub.f32 %v1662_v35, %v1663_v7  ;;  %v6988_v3 = vpack.c.bf16 %v1048_v34, %v1041_v22  ;;  %v6990_v17 = vpack.c.bf16 %v1656_v38, %v1649_v37 }
  0xc8   : > { %v6994_v24 = vpack.c.bf16 %v1670_v26, %v1663_v7  ;;  %v7018_v34 = vsub.f32 %v4933_v0, %v4933_v0  ;;  %v7026_v37 = vsub.f32 %v7014_v1, %v7014_v1 }
  0xc9   : > { %5348 = vmatmul.mubr.f32.vlgmr.msra.gmra.mrb[0].mxu0 %v443_v14  ;;  %v1020_v14 = vand.u32 4294901760, %v6859_v63  ;;  %v1050_v57 = vand.u32 4294901760, %v1049_v41  ;;  %v1665_v29 = vand.u32 4294901760, %v1664_v21 }
  0xca   : > { %6049 = vmatpush3.bf16.msk.msra.mxu0 %vm6757_vm8, %v6591_v44  ;;  %v7033_v7 = vand.u32 4294901760, %v7018_v34  ;;  %v1642_v18 = vand.u32 4294901760, %v7026_v37 }
  0xcb   : > { %6051 = vmatprep.subr.msk.bf16.mxu0 %vm6801_vm14, %v6591_v44  ;;  %v1021_v20 = vsub.f32 %v6859_v63, %v1020_v14  ;;  %v6950_v8 = vpack.c.bf16 %v1050_v57, %v1043_v39  ;;  %v1672_v39 = vand.u32 4294901760, %v1671_v31  ;;  %v6974_v57 = vpack.c.bf16 %v1669_v19, %v1662_v35 }
  0xcc   : > { %v6980_v59 = vpack.c.bf16 %v1020_v14, %v1013_v13  ;;  %v353_v13 = vpop.permute.xlu1 %352  ;;  %v1636_v31 = vsub.f32 %v7018_v34, %v7033_v7 }
  0xcd   : > { %v1022_v28 = vand.u32 4294901760, %v1021_v20  ;;  %v6952_v20 = vpack.c.bf16 %v1658_v61, %v1651_v60  ;;  %v6964_v41 = vpack.c.bf16 %v1672_v39, %v1665_v29  ;;  %v6986_v60 = vpack.c.bf16 %v1628_v16, %v1621_v15 }
  0xce   : > { %6053 = vmatpush3.bf16.msk.msra.mxu0 %vm6801_vm14, %v6591_v44  ;;  %v1643_v39 = vsub.f32 %v7026_v37, %v1642_v18 }
  0xcf   : > { %6055 = vmatprep.subr.msk.bf16.mxu0 %vm6831_vm11, %v6591_v44  ;;  %v6939_v32 = vpack.c.bf16 %v1022_v28, %v1015_v27  ;;  %v6956_v27 = vpack.c.bf16 %v6859_v63, %v6857_v62  ;;  %v1064_v28 = vand.u32 4294901760, %v1063_v25  ;;  %v4901_v62 = vsel %vm884_vm9, 1.0, %v6592_v54 }
  0xd0   : > { %v7004_v63 = vsel %vm7629_vm0, 1.0, %v6592_v54  ;;  %v7016_v15 = vsub.f32 %v4901_v62, %v4901_v62  ;;  %vm6595_vm0 = vmmov 0  }
  0xd1   : > { %5963 = vmatprep.subr.bf16.mxu1 %v6939_v32  ;;  %v6962_v33 = vpack.c.bf16 %v1064_v28, %v1057_v4  ;;  %v7022_v35 = vsub.f32 %v7004_v63, %v7004_v63 }
  0xd2   : > { %6057 = vmatpush3.bf16.msk.msra.mxu0 %vm6831_vm11, %v6591_v44  ;;  %v7029_v58 = vand.u32 4294901760, %v7016_v15 }
  0xd3   : > { %6060 = vmatprep.subr.msk.bf16.mxu0 %vm6898_vm1, %v6893_v11  ;;  %v1034_v2 = vand.u32 4294901760, %v7022_v35 }
  0xd4   : > { %v1028_v26 = vsub.f32 %v7016_v15, %v7029_v58 }
  0xd5   : > { %v1035_v29 = vsub.f32 %v7022_v35, %v1034_v2 }
  0xd6   : > { %6063 = vmatpush3.bf16.msk.msra.mxu0 %vm6898_vm1, %v6893_v11 }
  0xd7   : > { %6065 = vmatprep.subr.bf16.mxu0 %v6943_v36 }
 0x19c   : > { %v5349_v14 = vpop.f32.mrb[0].mxu0 }
 0x19d   : > { %v6382_v16 = vadd.f32 %v5349_v14, %v353_v13  ;;  %v858_v22 = vpop.f32.mrb[1].mxu0  ;;  %v7055_v13 = vand.u32 4294901760, %v1028_v26  ;;  %v5982_v26 = vpack.c.bf16 %v7022_v35, %v7016_v15 }
 0x19e   : > { %v6383_v47 = vadd.f32 %v858_v22, %v348_v30  ;;  %v7057_v22 = vand.u32 4294901760, %v1636_v31 }
 0x19f   : > { %v869_v38 = vmax.f32 %v6382_v16, 0.0  ;;  %v1036_v16 = vand.u32 4294901760, %v1035_v29 }
 0x1a0   : > { %v868_v56 = vmax.f32 %v6383_v47, 0.0  ;;  %v1644_v47 = vand.u32 4294901760, %v1643_v39 }
 0x1a1   : > { %v911_v61 = vsel %vm906_vm3, %v869_v38, 0 }
 0x1a2   : > { %v7036_v19 = vand.u32 4294901760, %v911_v61  ;;  %v908_v4 = vsel %vm906_vm3, %v868_v56, 0 }
 0x1a3   : > { %v7038_v21 = vand.u32 4294901760, %v908_v4 }
 0x1a4   : > { %v1001_v25 = vsub.f32 %v911_v61, %v7036_v19  ;;  %v5966_v61 = vpack.c.bf16 %v1036_v16, %v7055_v13 }
 0x1a5   : > { %v991_v28 = vsub.f32 %v908_v4, %v7038_v21  ;;  %v6068_v4 = vpack.c.bf16 %v1644_v47, %v7057_v22 }
 0x1a6   : > { %v7052_v30 = vand.u32 4294901760, %v1001_v25 }
 0x1a7   : > { %v992_v62 = vand.u32 4294901760, %v991_v28 }
 0x1a8   : > { %v1003_v0 = vsub.f32 %v1001_v25, %v7052_v30 }
 0x1a9   : > { %v993_v14 = vsub.f32 %v991_v28, %v992_v62 }
 0x1aa   : > { %v1004_v56 = vand.u32 4294901760, %v1003_v0  ;;  %v2136_v0 = vld [vmem:[%s7600_s4] sm:$0xff] }
 0x1ab   : > { %v994_v38 = vand.u32 4294901760, %v993_v14  ;;  %v2135_v14 = vld [vmem:[%s7599_s3 + $0x8] sm:$0xff] }
 0x1ad   : > { %5366 = vmatprep.mubr.f32.mxu1 %v994_v38  ;;  %5480 = vmatprep.mubr.f32.mxu0 %v994_v38 }
 0x1ae   : > { %5367 = vmatmul.mubr.f32.vlgmr.msra.gmra.mrb[0].mxu1 %v1004_v56  ;;  %5481 = vmatmul.mubr.f32.vlgmr.msra.gmra.mrb[2].mxu0 %v1004_v56 }
 0x1af   : > { %5965 = vmatpush3.bf16.msra.mxu1 %v6939_v32  ;;  %6067 = vmatpush3.bf16.msra.mxu0 %v6943_v36 }
 0x1b0   : > { %5385 = vmatprep.mubr.f32.mxu1 %v7038_v21  ;;  %5499 = vmatprep.mubr.f32.mxu0 %v7038_v21 }
 0x1b1   : > { %5967 = vmatprep.subr.bf16.mxu1 %v5966_v61  ;;  %6069 = vmatprep.subr.bf16.mxu0 %v6068_v4 }
 0x1b3   : > { %5969 = vmatpush3.bf16.msra.mxu1 %v5966_v61  ;;  %6071 = vmatpush3.bf16.msra.mxu0 %v6068_v4 }
 0x1b4   : > { %5971 = vmatprep.subr.bf16.mxu1 %v6950_v8  ;;  %6073 = vmatprep.subr.bf16.mxu0 %v6952_v20 }
 0x1b7   : > { %5973 = vmatpush3.bf16.msra.mxu1 %v6950_v8  ;;  %6075 = vmatpush3.bf16.msra.mxu0 %v6952_v20  ;;  %v6084_v8 = vpack.c.bf16 %v7026_v37, %v7018_v34  ;;  %v6016_v20 = vpack.c.bf16 %v1034_v2, %v7029_v58 }
 0x1b8   : > { %5975 = vmatprep.subr.bf16.mxu1 %v6962_v33  ;;  %6077 = vmatprep.subr.bf16.mxu0 %v6964_v41 }
 0x1bb   : > { %5977 = vmatpush3.bf16.msra.mxu1 %v6962_v33  ;;  %6079 = vmatpush3.bf16.msra.mxu0 %v6964_v41  ;;  %v6118_v33 = vpack.c.bf16 %v1642_v18, %v7033_v7 }
 0x1bc   : > { %5979 = vmatprep.subr.bf16.mxu1 %v6956_v27  ;;  %6081 = vmatprep.subr.bf16.mxu0 %v6960_v6 }
 0x1be   : > { %5386 = vmatmul.mubr.f32.vlgmr.msra.gmra.mrb[0].mxu1 %v7036_v19  ;;  %5500 = vmatmul.mubr.f32.vlgmr.msra.gmra.mrb[2].mxu0 %v7036_v19 }
 0x1bf   : > { %5981 = vmatpush3.bf16.msra.mxu1 %v6956_v27  ;;  %5404 = vmatprep.mubr.f32.mxu1 %v991_v28 }
 0x1c0   : > { %6083 = vmatpush3.bf16.msra.mxu0 %v6960_v6  ;;  %5518 = vmatprep.mubr.f32.mxu0 %v991_v28 }
 0x1c1   : > { %5983 = vmatprep.subr.bf16.mxu1 %v5982_v26  ;;  %6085 = vmatprep.subr.bf16.mxu0 %v6084_v8 }
 0x1c3   : > { %5985 = vmatpush3.bf16.msra.mxu1 %v5982_v26 }
 0x1c4   : > { %6087 = vmatpush3.bf16.msra.mxu0 %v6084_v8  ;;  %5987 = vmatprep.subr.bf16.mxu1 %v6968_v50 }
 0x1c5   : > { %6089 = vmatprep.subr.bf16.mxu0 %v6970_v51 }
 0x1c7   : > { %5989 = vmatpush3.bf16.msra.mxu1 %v6968_v50 }
 0x1c8   : > { %6091 = vmatpush3.bf16.msra.mxu0 %v6970_v51  ;;  %5991 = vmatprep.subr.bf16.mxu1 %v6972_v55 }
 0x1c9   : > { %6093 = vmatprep.subr.bf16.mxu0 %v6974_v57 }
 0x1cb   : > { %5993 = vmatpush3.bf16.msra.mxu1 %v6972_v55  ;;  %v2137_v55 = vld [vmem:[%s7600_s4 + $0x8] sm:$0xff] }
 0x1cc   : > { %6095 = vmatpush3.bf16.msra.mxu0 %v6974_v57  ;;  %5995 = vmatprep.subr.msk.bf16.mxu1 %vm6746_vm7, %v6591_v44 }
 0x1cd   : > { %6097 = vmatprep.subr.msk.bf16.mxu0 %vm6757_vm8, %v6591_v44 }
 0x1ce   : > { %5405 = vmatmul.mubr.f32.vlgmr.msra.gmra.mrb[0].mxu1 %v1001_v25 }
 0x1cf   : > { %5519 = vmatmul.mubr.f32.vlgmr.msra.gmra.mrb[2].mxu0 %v1001_v25  ;;  %5997 = vmatpush3.bf16.msk.msra.mxu1 %vm6746_vm7, %v6591_v44 }
 0x1d0   : > { %5423 = vmatprep.mubr.f32.mxu1 %v992_v62  ;;  %6099 = vmatpush3.bf16.msk.msra.mxu0 %vm6757_vm8, %v6591_v44 }
 0x1d1   : > { %5537 = vmatprep.mubr.f32.mxu0 %v992_v62  ;;  %5999 = vmatprep.subr.msk.bf16.mxu1 %vm6788_vm13, %v6591_v44 }
 0x1d2   : > { %6101 = vmatprep.subr.msk.bf16.mxu0 %vm6801_vm14, %v6591_v44 }
 0x1d3   : > { %6001 = vmatpush3.bf16.msk.msra.mxu1 %vm6788_vm13, %v6591_v44 }
 0x1d4   : > { %6103 = vmatpush3.bf16.msk.msra.mxu0 %vm6801_vm14, %v6591_v44  ;;  %6003 = vmatprep.subr.msk.bf16.mxu1 %vm6820_vm12, %v6591_v44 }
 0x1d5   : > { %6105 = vmatprep.subr.msk.bf16.mxu0 %vm6831_vm11, %v6591_v44 }
 0x1d7   : > { %6005 = vmatpush3.bf16.msk.msra.mxu1 %vm6820_vm12, %v6591_v44 }
 0x1d8   : > { %6107 = vmatpush3.bf16.msk.msra.mxu0 %vm6831_vm11, %v6591_v44  ;;  %6008 = vmatprep.subr.msk.bf16.mxu1 %vm6878_vm15, %v6890_v10 }
 0x1d9   : > { %6110 = vmatprep.subr.msk.bf16.mxu0 %vm6898_vm1, %v6893_v11 }
 0x1db   : > { %6011 = vmatpush3.bf16.msk.msra.mxu1 %vm6878_vm15, %v6890_v10 }
 0x1dc   : > { %6113 = vmatpush3.bf16.msk.msra.mxu0 %vm6898_vm1, %v6893_v11  ;;  %6013 = vmatprep.subr.bf16.mxu1 %v6980_v59 }
 0x1dd   : > { %6115 = vmatprep.subr.bf16.mxu0 %v6986_v60 }
 0x1de   : > { %5424 = vmatmul.mubr.f32.vlgmr.msra.gmra.mrb[0].mxu1 %v7052_v30 }
 0x1df   : > { %5538 = vmatmul.mubr.f32.vlgmr.msra.gmra.mrb[2].mxu0 %v7052_v30  ;;  %6015 = vmatpush3.bf16.msra.mxu1 %v6980_v59 }
 0x1e0   : > { %5442 = vmatprep.mubr.f32.mxu1 %v7038_v21  ;;  %6117 = vmatpush3.bf16.msra.mxu0 %v6986_v60 }
 0x1e1   : > { %5556 = vmatprep.mubr.f32.mxu0 %v7038_v21  ;;  %6017 = vmatprep.subr.bf16.mxu1 %v6016_v20 }
 0x1e2   : > { %6119 = vmatprep.subr.bf16.mxu0 %v6118_v33 }
 0x1e3   : > { %6019 = vmatpush3.bf16.msra.mxu1 %v6016_v20 }
 0x1e4   : > { %6121 = vmatpush3.bf16.msra.mxu0 %v6118_v33  ;;  %6021 = vmatprep.subr.bf16.mxu1 %v6988_v3 }
 0x1e5   : > { %6123 = vmatprep.subr.bf16.mxu0 %v6990_v17 }
 0x1e7   : > { %6023 = vmatpush3.bf16.msra.mxu1 %v6988_v3 }
 0x1e8   : > { %6125 = vmatpush3.bf16.msra.mxu0 %v6990_v17  ;;  %6025 = vmatprep.subr.bf16.mxu1 %v6992_v23 }
 0x1e9   : > { %6127 = vmatprep.subr.bf16.mxu0 %v6994_v24 }
 0x1eb   : > { %6027 = vmatpush3.bf16.msra.mxu1 %v6992_v23 }
 0x1ec   : > { %6129 = vmatpush3.bf16.msra.mxu0 %v6994_v24  ;;  %6029 = vmatprep.subr.msk.bf16.mxu1 %vm6746_vm7, %v6591_v44 }
 0x1ed   : > { %6131 = vmatprep.subr.msk.bf16.mxu0 %vm6757_vm8, %v6591_v44 }
 0x1ee   : > { %5443 = vmatmul.mubr.f32.vlgmr.msra.gmra.mrb[0].mxu1 %v7036_v19 }
 0x1ef   : > { %5557 = vmatmul.mubr.f32.vlgmr.msra.gmra.mrb[2].mxu0 %v7036_v19  ;;  %6031 = vmatpush3.bf16.msk.msra.mxu1 %vm6746_vm7, %v6591_v44 }
 0x1f0   : > { %5461 = vmatprep.mubr.f32.mxu1 %v7038_v21  ;;  %6133 = vmatpush3.bf16.msk.msra.mxu0 %vm6757_vm8, %v6591_v44 }
 0x1f1   : > { %5575 = vmatprep.mubr.f32.mxu0 %v7038_v21  ;;  %6033 = vmatprep.subr.msk.bf16.mxu1 %vm6788_vm13, %v6591_v44 }
 0x1f2   : > { %6135 = vmatprep.subr.msk.bf16.mxu0 %vm6801_vm14, %v6591_v44 }
 0x1f3   : > { %6035 = vmatpush3.bf16.msk.msra.mxu1 %vm6788_vm13, %v6591_v44  ;;  %vm7632_vm13 = vcmask 1043456  }
 0x1f4   : > { %6137 = vmatpush3.bf16.msk.msra.mxu0 %vm6801_vm14, %v6591_v44  ;;  %6037 = vmatprep.subr.msk.bf16.mxu1 %vm6820_vm12, %v6591_v44  ;;  %vm7303_vm14 = vmpackc.low %vm7632_vm13, %vm884_vm9  ;;  %vm2711_vm9 = vcmask 228352  }
 0x1f5   : > { %6139 = vmatprep.subr.msk.bf16.mxu0 %vm6831_vm11, %v6591_v44  ;;  %vm7635_vm4 = vmmov %vm7632_vm13  ;;  %vm4371_vm13 = vcmask 785408  }
 0x1f6   : > { %vm7636_vm5 = vmmov %vm7635_vm4 }
 0x1f7   : > { %6039 = vmatpush3.bf16.msk.msra.mxu1 %vm6820_vm12, %v6591_v44  ;;  %vm2148_vm12 = vcmask 392192   ;;  %vm7638_vm6 = vmmov %vm7635_vm4 }
 0x1f8   : > { %6141 = vmatpush3.bf16.msk.msra.mxu0 %vm6831_vm11, %v6591_v44  ;;  %6042 = vmatprep.subr.msk.bf16.mxu1 %vm6878_vm15, %v6890_v10  ;;  %vm2107_vm11 = vcmask 236544   ;;  %v2153_v16 = vsel %vm2148_vm12, %v2135_v14, 0 }
 0x1f9   : > { %6144 = vmatprep.subr.msk.bf16.mxu0 %vm6898_vm1, %v6893_v11  ;;  %v7260_v56 = vand.u32 4294901760, %v2153_v16 }
 0x1fb   : > { %6045 = vmatpush3.bf16.msk.msra.mxu1 %vm6878_vm15, %v6890_v10  ;;  %v7265_v26 = vsub.f32 %v2153_v16, %v7260_v56 }
 0x1fc   : > { %6147 = vmatpush3.bf16.msk.msra.mxu0 %vm6898_vm1, %v6893_v11  ;;  %v2150_v11 = vsel %vm2148_vm12, %v2134_v53, 0 }
 0x1fd   : > { %6221 = vmatprep.subr.msk.bf16.mxu0 %vm6746_vm7, %v6591_v44  ;;  %v7225_v41 = vand.u32 4294901760, %v2150_v11 }
 0x1fe   : > { %5462 = vmatmul.mubr.f32.vlgmr.msra.gmra.mrb[0].mxu1 %v7036_v19 }
 0x1ff   : > { %5576 = vmatmul.mubr.f32.vlgmr.msra.gmra.mrb[2].mxu0 %v7036_v19  ;;  %v7232_v50 = vsub.f32 %v2150_v11, %v7225_v41 }
 0x200   : > { %6223 = vmatpush3.bf16.msk.msra.mxu0 %vm6746_vm7, %v6591_v44 }
 0x201   : > { %v2228_v51 = vand.u32 4294901760, %v7232_v50 }
 0x203   : > { %v2229_v57 = vsub.f32 %v7232_v50, %v2228_v51 }
 0x205   : > { %v2230_v17 = vand.u32 4294901760, %v2229_v57 }
 0x207   : > { %5590 = vmatprep.mubr.f32.mxu1 %v2230_v17 }
 0x2d1   : > { %v5463_v48 = vpop.f32.mrb[0].mxu1 }
 0x2d2   : > { %v5577_v49 = vpop.f32.mrb[2].mxu0  ;;  %v1487_v52 = vpop.f32.mrb[1].mxu1 }
 0x2d3   : > { %v2106_v5 = vmax.f32 %v5463_v48, %v5577_v49  ;;  %v2095_v10 = vpop.f32.mrb[3].mxu0  ;;  %v2238_v49 = vand.u32 4294901760, %v7265_v26 }
 0x2d4   : > { %v2105_v12 = vmax.f32 %v1487_v52, %v2095_v10 }
 0x2d5   : > { %2109 = vst.msk [vmem:[#allocation2 + $0x8] sm:$0xff] %vm2107_vm11, %v2106_v5  ;;  %2114 = vrot.lane.b32.xlu1 %v2106_v5, %s6589_s29 }
 0x2d6   : > { %2108 = vst.msk [vmem:[#allocation2] sm:$0xff] %vm2107_vm11, %v2105_v12  ;;  %2112 = vrot.lane.b32.xlu0 %v2105_v12, %s6589_s29 }
 0x2d9   : > { %2122 = vrot.lane.b32.xlu1 %v2106_v5, %s6588_s28 }
 0x2da   : > { %2120 = vrot.lane.b32.xlu0 %v2105_v12, %s6588_s28 }
 0x2dc   : > { %v2129_v3 = vld [vmem:[#allocation2 + $0x8] sm:$0xff] }
 0x2dd   : > { %2145 = vperm.xlu1 %6522, %v2137_v55   ;;  %v2128_v23 = vld [vmem:[#allocation2] sm:$0xff]  ;;  %v2159_v24 = vand.u32 4294901760, %v2129_v3 }
 0x2de   : > { %v2156_v35 = vand.u32 4294901760, %v2128_v23  ;;  %2140 = vperm.xlu0 %6523, %v2136_v0  }
 0x2df   : > { %v2255_v37 = vsub.f32 %v2129_v3, %v2159_v24  ;;  %v2239_v3 = vsub.f32 %v7265_v26, %v2238_v49 }
 0x2e0   : > { %v7243_v2 = vpack.c.bf16 %v2159_v24, %v2156_v35  ;;  %v2248_v18 = vsub.f32 %v2128_v23, %v2156_v35 }
 0x2e1   : > { %v2256_v19 = vand.u32 4294901760, %v2255_v37 }
 0x2e2   : > { %6149 = vmatprep.subr.bf16.mxu1 %v7243_v2  ;;  %v2249_v21 = vand.u32 4294901760, %v2248_v18  ;;  %v7246_v25 = vpack.c.bf16 %v2255_v37, %v2248_v18 }
 0x2e3   : > { %6151 = vmatpush3.bf16.msra.mxu1 %v7243_v2  ;;  %v2257_v28 = vsub.f32 %v2255_v37, %v2256_v19 }
 0x2e4   : > { %v2250_v29 = vsub.f32 %v2248_v18, %v2249_v21  ;;  %v7249_v31 = vpack.c.bf16 %v2256_v19, %v2249_v21  ;;  %v2240_v21 = vand.u32 4294901760, %v2239_v3 }
 0x2e5   : > { %v2258_v39 = vand.u32 4294901760, %v2257_v28 }
 0x2e6   : > { %v2251_v30 = vand.u32 4294901760, %v2250_v29 }
 0x2e8   : > { %v6160_v62 = vpack.c.bf16 %v2258_v39, %v2251_v30 }
 0x347   : > { %v2115_v47 = vpop.permute.xlu1 %2114 }
 0x348   : > { %2119 = vst.msk [vmem:[#allocation2 + $0x18] sm:$0xff] %vm2107_vm11, %v2115_v47  ;;  %v2113_v38 = vpop.permute.xlu0 %2112 }
 0x349   : > { %2118 = vst.msk [vmem:[#allocation2 + $0x10] sm:$0xff] %vm2107_vm11, %v2113_v38 }
 0x34b   : > { %v2123_v61 = vpop.permute.xlu1 %2122 }
 0x34c   : > { %2127 = vst.msk [vmem:[#allocation2 + $0x28] sm:$0xff] %vm2107_vm11, %v2123_v61  ;;  %v2121_v4 = vpop.permute.xlu0 %2120 }
 0x34d   : > { %2126 = vst.msk [vmem:[#allocation2 + $0x20] sm:$0xff] %vm2107_vm11, %v2121_v4 }
 0x34f   : > { %v2131_v8 = vld [vmem:[#allocation2 + $0x18] sm:$0xff] }
 0x350   : > { %v2130_v20 = vld [vmem:[#allocation2 + $0x10] sm:$0xff]  ;;  %v2165_v33 = vand.u32 4294901760, %v2131_v8 }
 0x351   : > { %v2162_v48 = vand.u32 4294901760, %v2130_v20 }
 0x352   : > { %v2269_v52 = vsub.f32 %v2131_v8, %v2165_v33 }
 0x353   : > { %v7268_v53 = vpack.c.bf16 %v2165_v33, %v2162_v48  ;;  %v2133_v5 = vld [vmem:[#allocation2 + $0x28] sm:$0xff]  ;;  %v2262_v10 = vsub.f32 %v2130_v20, %v2162_v48 }
 0x354   : > { %v2132_v11 = vld [vmem:[#allocation2 + $0x20] sm:$0xff]  ;;  %v2171_v12 = vand.u32 4294901760, %v2133_v5  ;;  %v2270_v55 = vand.u32 4294901760, %v2269_v52 }
 0x355   : > { %6153 = vmatprep.subr.bf16.mxu1 %v7268_v53  ;;  %v2168_v57 = vand.u32 4294901760, %v2132_v11  ;;  %v2263_v17 = vand.u32 4294901760, %v2262_v10  ;;  %v6176_v61 = vpack.c.bf16 %v2269_v52, %v2262_v10 }
 0x356   : > { %6155 = vmatpush3.bf16.msra.mxu1 %v7268_v53  ;;  %v2271_v23 = vsub.f32 %v2269_v52, %v2270_v55  ;;  %v2283_v24 = vsub.f32 %v2133_v5, %v2171_v12 }
 0x357   : > { %v6156_v35 = vpack.c.bf16 %v2171_v12, %v2168_v57  ;;  %v2264_v37 = vsub.f32 %v2262_v10, %v2263_v17  ;;  %v2276_v18 = vsub.f32 %v2132_v11, %v2168_v57 }
 0x358   : > { %v2284_v19 = vand.u32 4294901760, %v2283_v24  ;;  %v2272_v29 = vand.u32 4294901760, %v2271_v23 }
 0x359   : > { %6157 = vmatprep.subr.bf16.mxu1 %v6156_v35  ;;  %v2265_v28 = vand.u32 4294901760, %v2264_v37  ;;  %v2277_v39 = vand.u32 4294901760, %v2276_v18  ;;  %v6180_v4 = vpack.c.bf16 %v2283_v24, %v2276_v18 }
 0x35a   : > { %6159 = vmatpush3.bf16.msra.mxu1 %v6156_v35  ;;  %v2285_v30 = vsub.f32 %v2283_v24, %v2284_v19 }
 0x35b   : > { %6161 = vmatprep.subr.bf16.mxu1 %v6160_v62  ;;  %v2278_v0 = vsub.f32 %v2276_v18, %v2277_v39  ;;  %v6164_v14 = vpack.c.bf16 %v2272_v29, %v2265_v28 }
 0x35c   : > { %v2286_v47 = vand.u32 4294901760, %v2285_v30  ;;  %v2146_v40 = vpop.permute.xlu1 %2145 }
 0x35d   : > { %5591 = vmatmul.mubr.f32.vlgmr.msra.gmra.mrb[2].mxu1 %v2240_v21  ;;  %v2279_v16 = vand.u32 4294901760, %v2278_v0 }
 0x35e   : > { %6163 = vmatpush3.bf16.msra.mxu1 %v6160_v62  ;;  %5605 = vmatprep.mubr.f32.mxu1 %v7225_v41  ;;  %v6204_v62 = vpack.c.bf16 %v2284_v19, %v2277_v39 }
 0x35f   : > { %6165 = vmatprep.subr.bf16.mxu1 %v6164_v14  ;;  %v6168_v38 = vpack.c.bf16 %v2286_v47, %v2279_v16 }
 0x362   : > { %6167 = vmatpush3.bf16.msra.mxu1 %v6164_v14 }
 0x363   : > { %6169 = vmatprep.subr.bf16.mxu1 %v6168_v38 }
 0x366   : > { %6171 = vmatpush3.bf16.msra.mxu1 %v6168_v38 }
 0x367   : > { %6173 = vmatprep.subr.bf16.mxu1 %v7246_v25 }
 0x369   : > { %5606 = vmatmul.mubr.f32.vlgmr.msra.gmra.mrb[2].mxu1 %v7260_v56 }
 0x36a   : > { %6175 = vmatpush3.bf16.msra.mxu1 %v7246_v25  ;;  %5620 = vmatprep.mubr.f32.mxu1 %v7232_v50  ;;  %v6200_v25 = vpack.c.bf16 %v2270_v55, %v2263_v17  ;;  %v7297_v50 = vpack.c.bf16 %v7004_v63, %v6593_v9 }
 0x36b   : > { %6177 = vmatprep.subr.bf16.mxu1 %v6176_v61 }
 0x36c   : > { %6226 = vmatprep.subr.msk.bf16.mxu0 %vm7303_vm14, %v7297_v50 }
 0x36d   : > { %6229 = vmatpush3.bf16.msk.msra.mxu0 %vm7303_vm14, %v7297_v50 }
 0x36e   : > { %6179 = vmatpush3.bf16.msra.mxu1 %v6176_v61  ;;  %6231 = vmatprep.subr.bf16.mxu0 %v6939_v32 }
 0x36f   : > { %6181 = vmatprep.subr.bf16.mxu1 %v6180_v4 }
 0x372   : > { %6183 = vmatpush3.bf16.msra.mxu1 %v6180_v4 }
 0x373   : > { %6185 = vmatprep.subr.bf16.mxu1 %v7243_v2 }
 0x375   : > { %5621 = vmatmul.mubr.f32.vlgmr.msra.gmra.mrb[2].mxu1 %v7265_v26 }
 0x376   : > { %6187 = vmatpush3.bf16.msra.mxu1 %v7243_v2  ;;  %5635 = vmatprep.mubr.f32.mxu1 %v2228_v51  ;;  %v3808_v51 = vld [vmem:[%s7601_s5] sm:$0xff] }
 0x377   : > { %6189 = vmatprep.subr.bf16.mxu1 %v7268_v53 }
 0x37a   : > { %6191 = vmatpush3.bf16.msra.mxu1 %v7268_v53 }
 0x37b   : > { %6193 = vmatprep.subr.bf16.mxu1 %v6156_v35 }
 0x37e   : > { %6195 = vmatpush3.bf16.msra.mxu1 %v6156_v35 }
 0x37f   : > { %6197 = vmatprep.subr.bf16.mxu1 %v7249_v31 }
 0x381   : > { %5636 = vmatmul.mubr.f32.vlgmr.msra.gmra.mrb[2].mxu1 %v2238_v49 }
 0x382   : > { %6199 = vmatpush3.bf16.msra.mxu1 %v7249_v31  ;;  %5650 = vmatprep.mubr.f32.mxu1 %v7225_v41 }
 0x383   : > { %6201 = vmatprep.subr.bf16.mxu1 %v6200_v25 }
 0x386   : > { %6203 = vmatpush3.bf16.msra.mxu1 %v6200_v25 }
 0x387   : > { %6205 = vmatprep.subr.bf16.mxu1 %v6204_v62 }
 0x38a   : > { %6207 = vmatpush3.bf16.msra.mxu1 %v6204_v62 }
 0x38b   : > { %6209 = vmatprep.subr.bf16.mxu1 %v7243_v2 }
 0x38d   : > { %5651 = vmatmul.mubr.f32.vlgmr.msra.gmra.mrb[2].mxu1 %v7260_v56 }
 0x38e   : > { %6211 = vmatpush3.bf16.msra.mxu1 %v7243_v2  ;;  %5665 = vmatprep.mubr.f32.mxu1 %v7225_v41  ;;  %v2719_v41 = vsel %vm7635_vm4, %v7004_v63, 0  ;;  %v2141_v2 = vpop.permute.xlu0 %2140  ;;  %vm4341_vm4 = vcmask 288962  }
 0x38f   : > { %6213 = vmatprep.subr.bf16.mxu1 %v7268_v53 }
 0x392   : > { %6215 = vmatpush3.bf16.msra.mxu1 %v7268_v53 }
 0x393   : > { %6217 = vmatprep.subr.bf16.mxu1 %v6156_v35 }
 0x396   : > { %6219 = vmatpush3.bf16.msra.mxu1 %v6156_v35 }
 0x399   : > { %5666 = vmatmul.mubr.f32.vlgmr.msra.gmra.mrb[2].mxu1 %v7260_v56  ;;  %v2833_v56 = vsub.f32 %v2719_v41, %v2719_v41  ;;  %v3816_v41 = vsel %vm2148_vm12, %v3808_v51, 0  ;;  %vm4330_vm12 = vcmask 90112  }
 0x39a   : > { %5812 = vmatprep.mubr.msk.f32.mxu1 %vm6595_vm0, %v6592_v54 }
 0x39b   : > { %v2834_v49 = vand.u32 4294901760, %v2833_v56  ;;  %v6242_v18 = vpack.c.bf16 %v2833_v56, %v7016_v15 }
 0x39d   : > { %v2835_v63 = vsub.f32 %v2833_v56, %v2834_v49 }
 0x39f   : > { %v2836_v17 = vand.u32 4294901760, %v2835_v63 }
 0x3a1   : > { %v6234_v37 = vpack.c.bf16 %v2836_v17, %v7055_v13 }
 0x46c   : > { %v5667_v31 = vpop.f32.mrb[2].mxu1 }
 0x46d   : > { %v6384_v26 = vadd.f32 %v5667_v31, %v2146_v40  ;;  %v2699_v8 = vpop.f32.mrb[3].mxu1  ;;  %v7475_v31 = vand.u32 4294901760, %v3816_v41 }
 0x46e   : > { %v6385_v20 = vadd.f32 %v2699_v8, %v2141_v2 }
 0x46f   : > { %v2710_v33 = vmax.f32 %v6384_v26, 0.0  ;;  %v7480_v8 = vsub.f32 %v3816_v41, %v7475_v31 }
 0x470   : > { %v2709_v48 = vmax.f32 %v6385_v20, 0.0 }
 0x471   : > { %v2716_v52 = vsel %vm2711_vm9, %v2710_v33, 0 }
 0x472   : > { %v7316_v53 = vand.u32 4294901760, %v2716_v52  ;;  %v2713_v5 = vsel %vm2711_vm9, %v2709_v48, 0  ;;  %vm4346_vm9 = vcmask 388387  }
 0x473   : > { %v7318_v10 = vand.u32 4294901760, %v2713_v5 }
 0x474   : > { %v7321_v11 = vsub.f32 %v2716_v52, %v7316_v53 }
 0x475   : > { %v7324_v12 = vsub.f32 %v2713_v5, %v7318_v10 }
 0x476   : > { %v7327_v55 = vand.u32 4294901760, %v7321_v11 }
 0x477   : > { %v7330_v57 = vand.u32 4294901760, %v7324_v12 }
 0x478   : > { %v2803_v3 = vsub.f32 %v7321_v11, %v7327_v55 }
 0x479   : > { %v2793_v23 = vsub.f32 %v7324_v12, %v7330_v57 }
 0x47a   : > { %v2804_v35 = vand.u32 4294901760, %v2803_v3 }
 0x47b   : > { %v2794_v24 = vand.u32 4294901760, %v2793_v23 }
 0x47d   : > { %5676 = vmatprep.mubr.f32.mxu0 %v2794_v24 }
 0x47e   : > { %5677 = vmatmul.mubr.f32.vlgmr.msra.gmra.mrb[4].mxu0 %v2804_v35 }
 0x47f   : > { %6233 = vmatpush3.bf16.msra.mxu0 %v6939_v32  ;;  %5687 = vmatprep.mubr.f32.mxu0 %v7318_v10  ;;  %v6260_v32 = vpack.c.bf16 %v2834_v49, %v7029_v58  ;;  %v6278_v58 = vpack.c.bf16 %v7014_v1, %v6593_v9  ;;  %v3891_v49 = vand.u32 4294901760, %v7480_v8 }
 0x480   : > { %6235 = vmatprep.subr.bf16.mxu0 %v6234_v37 }
 0x483   : > { %6237 = vmatpush3.bf16.msra.mxu0 %v6234_v37 }
 0x484   : > { %6239 = vmatprep.subr.bf16.mxu0 %v6956_v27 }
 0x486   : > { %5688 = vmatmul.mubr.f32.vlgmr.msra.gmra.mrb[4].mxu0 %v7316_v53 }
 0x487   : > { %6241 = vmatpush3.bf16.msra.mxu0 %v6956_v27  ;;  %5698 = vmatprep.mubr.f32.mxu0 %v7324_v12  ;;  %v3250_v27 = vsel %vm7636_vm5, %v7014_v1, 0  ;;  %vm4351_vm5 = vcmask 487812  }
 0x488   : > { %6243 = vmatprep.subr.bf16.mxu0 %v6242_v18  ;;  %v3364_v15 = vsub.f32 %v3250_v27, %v3250_v27 }
 0x48a   : > { %v6296_v46 = vpack.c.bf16 %v3364_v15, %v7018_v34 }
 0x48b   : > { %6245 = vmatpush3.bf16.msra.mxu0 %v6242_v18 }
 0x48c   : > { %6247 = vmatprep.subr.msk.bf16.mxu0 %vm6746_vm7, %v6591_v44 }
 0x48e   : > { %5699 = vmatmul.mubr.f32.vlgmr.msra.gmra.mrb[4].mxu0 %v7321_v11 }
 0x48f   : > { %6249 = vmatpush3.bf16.msk.msra.mxu0 %vm6746_vm7, %v6591_v44  ;;  %5709 = vmatprep.mubr.f32.mxu0 %v7330_v57 }
 0x490   : > { %6252 = vmatprep.subr.msk.bf16.mxu0 %vm7303_vm14, %v7297_v50 }
 0x493   : > { %6255 = vmatpush3.bf16.msk.msra.mxu0 %vm7303_vm14, %v7297_v50 }
 0x494   : > { %6257 = vmatprep.subr.bf16.mxu0 %v6980_v59 }
 0x496   : > { %5710 = vmatmul.mubr.f32.vlgmr.msra.gmra.mrb[4].mxu0 %v7327_v55 }
 0x497   : > { %6259 = vmatpush3.bf16.msra.mxu0 %v6980_v59  ;;  %5720 = vmatprep.mubr.f32.mxu0 %v7318_v10  ;;  %v3365_v59 = vand.u32 4294901760, %v3364_v15 }
 0x498   : > { %6261 = vmatprep.subr.bf16.mxu0 %v6260_v32 }
 0x499   : > { %v3366_v43 = vsub.f32 %v3364_v15, %v3365_v59 }
 0x49b   : > { %6263 = vmatpush3.bf16.msra.mxu0 %v6260_v32  ;;  %v3367_v9 = vand.u32 4294901760, %v3366_v43 }
 0x49c   : > { %6265 = vmatprep.subr.msk.bf16.mxu0 %vm6746_vm7, %v6591_v44 }
 0x49d   : > { %v6288_v42 = vpack.c.bf16 %v3367_v9, %v7057_v22  ;;  %v3809_v22 = vld [vmem:[%s7602_s6] sm:$0xff] }
 0x49e   : > { %5721 = vmatmul.mubr.f32.vlgmr.msra.gmra.mrb[4].mxu0 %v7316_v53 }
 0x49f   : > { %6267 = vmatpush3.bf16.msk.msra.mxu0 %vm6746_vm7, %v6591_v44  ;;  %5731 = vmatprep.mubr.f32.mxu0 %v7318_v10  ;;  %vm7637_vm7 = vmmov %vm7630_vm2 }
 0x4a0   : > { %6270 = vmatprep.subr.msk.bf16.mxu0 %vm7303_vm14, %v7297_v50  ;;  %vm7388_vm15 = vmpackc.low %vm7638_vm6, %vm7637_vm7  ;;  %vm4356_vm7 = vcmask 587237   ;;  %vm4361_vm6 = vcmask 686662  }
 0x4a3   : > { %6273 = vmatpush3.bf16.msk.msra.mxu0 %vm7303_vm14, %v7297_v50  ;;  %vm4336_vm14 = vcmask 189537  }
 0x4a4   : > { %6275 = vmatprep.subr.msk.bf16.mxu0 %vm6757_vm8, %v6591_v44 }
 0x4a6   : > { %5732 = vmatmul.mubr.f32.vlgmr.msra.gmra.mrb[4].mxu0 %v7316_v53 }
 0x4a7   : > { %6277 = vmatpush3.bf16.msk.msra.mxu0 %vm6757_vm8, %v6591_v44  ;;  %5742 = vmatprep.mubr.f32.mxu0 %v2794_v24 }
 0x4a8   : > { %6280 = vmatprep.subr.msk.bf16.mxu0 %vm7388_vm15, %v6278_v58 }
 0x4ab   : > { %6283 = vmatpush3.bf16.msk.msra.mxu0 %vm7388_vm15, %v6278_v58 }
 0x4ac   : > { %6285 = vmatprep.subr.bf16.mxu0 %v6943_v36 }
 0x4ae   : > { %5743 = vmatmul.mubr.f32.vlgmr.msra.gmra.mrb[6].mxu0 %v2804_v35 }
 0x4af   : > { %6287 = vmatpush3.bf16.msra.mxu0 %v6943_v36  ;;  %5753 = vmatprep.mubr.f32.mxu0 %v7318_v10  ;;  %v6314_v36 = vpack.c.bf16 %v3365_v59, %v7033_v7 }
 0x4b0   : > { %6289 = vmatprep.subr.bf16.mxu0 %v6288_v42 }
 0x4b3   : > { %6291 = vmatpush3.bf16.msra.mxu0 %v6288_v42 }
 0x4b4   : > { %6293 = vmatprep.subr.bf16.mxu0 %v6960_v6 }
 0x4b6   : > { %5754 = vmatmul.mubr.f32.vlgmr.msra.gmra.mrb[6].mxu0 %v7316_v53 }
 0x4b7   : > { %6295 = vmatpush3.bf16.msra.mxu0 %v6960_v6  ;;  %5764 = vmatprep.mubr.f32.mxu0 %v7324_v12  ;;  %v6594_v6 = vmov 0.0|0.0  }
 0x4b8   : > { %6297 = vmatprep.subr.bf16.mxu0 %v6296_v46  ;;  %6328 = vmatprep.subr.bf16.mxu1 %v6594_v6 }
 0x4bb   : > { %6299 = vmatpush3.bf16.msra.mxu0 %v6296_v46 }
 0x4bc   : > { %6301 = vmatprep.subr.msk.bf16.mxu0 %vm6757_vm8, %v6591_v44 }
 0x4be   : > { %5765 = vmatmul.mubr.f32.vlgmr.msra.gmra.mrb[6].mxu0 %v7321_v11 }
 0x4bf   : > { %6303 = vmatpush3.bf16.msk.msra.mxu0 %vm6757_vm8, %v6591_v44  ;;  %5775 = vmatprep.mubr.f32.mxu0 %v7330_v57 }
 0x4c0   : > { %6306 = vmatprep.subr.msk.bf16.mxu0 %vm7388_vm15, %v6278_v58 }
 0x4c3   : > { %6309 = vmatpush3.bf16.msk.msra.mxu0 %vm7388_vm15, %v6278_v58 }
 0x4c4   : > { %6311 = vmatprep.subr.bf16.mxu0 %v6986_v60 }
 0x4c6   : > { %5776 = vmatmul.mubr.f32.vlgmr.msra.gmra.mrb[6].mxu0 %v7327_v55  ;;  %v3892_v55 = vsub.f32 %v7480_v8, %v3891_v49 }
 0x4c7   : > { %6313 = vmatpush3.bf16.msra.mxu0 %v6986_v60  ;;  %5786 = vmatprep.mubr.f32.mxu0 %v7318_v10 }
 0x4c8   : > { %6315 = vmatprep.subr.bf16.mxu0 %v6314_v36  ;;  %v3893_v32 = vand.u32 4294901760, %v3892_v55 }
 0x4cb   : > { %6317 = vmatpush3.bf16.msra.mxu0 %v6314_v36 }
 0x4cc   : > { %6319 = vmatprep.subr.msk.bf16.mxu0 %vm6757_vm8, %v6591_v44 }
 0x4ce   : > { %5787 = vmatmul.mubr.f32.vlgmr.msra.gmra.mrb[6].mxu0 %v7316_v53 }
 0x4cf   : > { %6321 = vmatpush3.bf16.msk.msra.mxu0 %vm6757_vm8, %v6591_v44  ;;  %5797 = vmatprep.mubr.f32.mxu0 %v7318_v10  ;;  %vm7641_vm8 = vcmask 97280  }
 0x4d0   : > { %6324 = vmatprep.subr.msk.bf16.mxu0 %vm7388_vm15, %v6278_v58  ;;  %vm7642_vm1 = vmmov %vm7641_vm8 }
 0x4d1   : > { %vm7643_vm2 = vmmov %vm7642_vm1 }
 0x4d2   : > { %vm7644_vm10 = vmmov %vm7642_vm1 }
 0x4d3   : > { %6327 = vmatpush3.bf16.msk.msra.mxu0 %vm7388_vm15, %v6278_v58  ;;  %vm7645_vm3 = vmmov %vm7642_vm1  ;;  %vm4366_vm15 = vcmask 786087  }
 0x4d4   : > { %5890 = vmatprep.subr.mxu0 %v6592_v54  ;;  %vm7646_vm11 = vmmov %vm7642_vm1 }
 0x4d6   : > { %5798 = vmatmul.mubr.f32.vlgmr.msra.gmra.mrb[6].mxu0 %v7316_v53 }
 0x4d7   : > { %5892 = vmatprep.mubr.msk.f32.mxu0 %vm6595_vm0, %v6592_v54 }
 0x579   : > { %v5733_v60 = vpop.f32.mrb[4].mxu0 }
 0x57a   : > { %v3239_v1 = vpop.f32.mrb[5].mxu0 }
 0x5a9   : > { %v5799_v34 = vpop.f32.mrb[6].mxu0 }
 0x5aa   : > { %v3781_v45 = vmax.f32 %v5733_v60, %v5799_v34  ;;  %v3770_v44 = vpop.f32.mrb[7].mxu0 }
 0x5ab   : > { %v3780_v7 = vmax.f32 %v3239_v1, %v3770_v44 }
 0x5ac   : > { %3783 = vst.msk [vmem:[#allocation2 + $0x8] sm:$0xff] %vm7641_vm8, %v3781_v45  ;;  %3788 = vrot.lane.b32.xlu0 %v3781_v45, %s6589_s29  ;;  %vm4824_vm8 = vcmask 32768  }
 0x5ad   : > { %3782 = vst.msk [vmem:[#allocation2] sm:$0xff] %vm7642_vm1, %v3780_v7  ;;  %3786 = vrot.lane.b32.xlu1 %v3780_v7, %s6589_s29 }
 0x5b0   : > { %3796 = vrot.lane.b32.xlu0 %v3781_v45, %s6588_s28 }
 0x5b1   : > { %3794 = vrot.lane.b32.xlu1 %v3780_v7, %s6588_s28 }
 0x5b3   : > { %v3803_v19 = vld [vmem:[#allocation2 + $0x8] sm:$0xff] }
 0x5b4   : > { %v3802_v21 = vld [vmem:[#allocation2] sm:$0xff]  ;;  %v3822_v28 = vand.u32 4294901760, %v3803_v19 }
 0x5b5   : > { %3812 = vperm.xlu1 %6522, %v3809_v22   ;;  %v3819_v29 = vand.u32 4294901760, %v3802_v21 }
 0x5b6   : > { %v7454_v39 = vsub.f32 %v3803_v19, %v3822_v28 }
 0x5b7   : > { %v7456_v30 = vpack.c.bf16 %v3822_v28, %v3819_v29  ;;  %v7458_v0 = vsub.f32 %v3802_v21, %v3819_v29 }
 0x5b8   : > { %v3909_v14 = vand.u32 4294901760, %v7454_v39 }
 0x5b9   : > { %6330 = vmatpush3.bf16.msra.mxu1 %v7456_v30  ;;  %v3902_v16 = vand.u32 4294901760, %v7458_v0  ;;  %v6347_v47 = vpack.c.bf16 %v7454_v39, %v7458_v0 }
 0x5ba   : > { %6331 = vmatprep.subr.bf16.mxu1 %v6594_v6  ;;  %v3910_v38 = vsub.f32 %v7454_v39, %v3909_v14 }
 0x5bb   : > { %v3903_v61 = vsub.f32 %v7458_v0, %v3902_v16  ;;  %v7468_v4 = vpack.c.bf16 %v3909_v14, %v3902_v16 }
 0x5bc   : > { %v3911_v25 = vand.u32 4294901760, %v3910_v38 }
 0x5bd   : > { %v3904_v62 = vand.u32 4294901760, %v3903_v61 }
 0x5bf   : > { %v6338_v50 = vpack.c.bf16 %v3911_v25, %v3904_v62 }
 0x61e   : > { %v3789_v2 = vpop.permute.xlu0 %3788 }
 0x61f   : > { %3793 = vst.msk [vmem:[#allocation2 + $0x18] sm:$0xff] %vm7643_vm2, %v3789_v2  ;;  %v3787_v40 = vpop.permute.xlu1 %3786 }
 0x620   : > { %3792 = vst.msk [vmem:[#allocation2 + $0x10] sm:$0xff] %vm7644_vm10, %v3787_v40 }
 0x622   : > { %v3797_v56 = vpop.permute.xlu0 %3796 }
 0x623   : > { %3801 = vst.msk [vmem:[#allocation2 + $0x28] sm:$0xff] %vm7645_vm3, %v3797_v56  ;;  %v3795_v26 = vpop.permute.xlu1 %3794 }
 0x624   : > { %3800 = vst.msk [vmem:[#allocation2 + $0x20] sm:$0xff] %vm7646_vm11, %v3795_v26  ;;  %v4370_v26 = vld [vmem:[%s7604_s8] sm:$0x1] }
 0x626   : > { %v3805_v20 = vld [vmem:[#allocation2 + $0x18] sm:$0xff] }
 0x627   : > { %v3804_v33 = vld [vmem:[#allocation2 + $0x10] sm:$0xff]  ;;  %v3828_v48 = vand.u32 4294901760, %v3805_v20 }
 0x628   : > { %v3825_v52 = vand.u32 4294901760, %v3804_v33 }
 0x629   : > { %v3922_v53 = vsub.f32 %v3805_v20, %v3828_v48 }
 0x62a   : > { %v7484_v5 = vpack.c.bf16 %v3828_v48, %v3825_v52  ;;  %v3915_v10 = vsub.f32 %v3804_v33, %v3825_v52  ;;  %v3807_v11 = vld [vmem:[#allocation2 + $0x28] sm:$0xff] }
 0x62b   : > { %v3806_v63 = vld [vmem:[#allocation2 + $0x20] sm:$0xff]  ;;  %v3834_v12 = vand.u32 4294901760, %v3807_v11  ;;  %v3923_v57 = vand.u32 4294901760, %v3922_v53 }
 0x62c   : > { %6333 = vmatpush3.bf16.msra.mxu1 %v7484_v5  ;;  %v3831_v3 = vand.u32 4294901760, %v3806_v63  ;;  %v3916_v17 = vand.u32 4294901760, %v3915_v10  ;;  %v6350_v60 = vpack.c.bf16 %v3922_v53, %v3915_v10 }
 0x62d   : > { %6334 = vmatprep.subr.bf16.mxu1 %v6594_v6  ;;  %v3936_v23 = vsub.f32 %v3807_v11, %v3834_v12  ;;  %v3924_v18 = vsub.f32 %v3922_v53, %v3923_v57 }
 0x62e   : > { %v6335_v24 = vpack.c.bf16 %v3834_v12, %v3831_v3  ;;  %v3929_v35 = vsub.f32 %v3806_v63, %v3831_v3  ;;  %v3917_v37 = vsub.f32 %v3915_v10, %v3916_v17  ;;  %v6368_v34 = vpack.c.bf16 %v3923_v57, %v3916_v17 }
 0x62f   : > { %v3937_v27 = vand.u32 4294901760, %v3936_v23  ;;  %v3925_v58 = vand.u32 4294901760, %v3924_v18 }
 0x630   : > { %6336 = vmatpush3.bf16.msra.mxu1 %v6335_v24  ;;  %v3930_v15 = vand.u32 4294901760, %v3929_v35  ;;  %v3918_v59 = vand.u32 4294901760, %v3917_v37  ;;  %v6353_v1 = vpack.c.bf16 %v3936_v23, %v3929_v35 }
 0x631   : > { %6337 = vmatprep.subr.bf16.mxu1 %v6594_v6  ;;  %v3938_v13 = vsub.f32 %v3936_v23, %v3937_v27 }
 0x632   : > { %v3931_v43 = vsub.f32 %v3929_v35, %v3930_v15  ;;  %v6341_v9 = vpack.c.bf16 %v3925_v58, %v3918_v59  ;;  %v6371_v45 = vpack.c.bf16 %v3937_v27, %v3930_v15 }
 0x633   : > { %5813 = vmatmul.mubr.f32.vlgmr.msra.gmra.mrb[4].mxu1 %v3893_v32  ;;  %v3939_v46 = vand.u32 4294901760, %v3938_v13 }
 0x634   : > { %6339 = vmatpush3.bf16.msra.mxu1 %v6338_v50  ;;  %5827 = vmatprep.mubr.msk.f32.mxu1 %vm6595_vm0, %v6592_v54  ;;  %v3932_v42 = vand.u32 4294901760, %v3931_v43  ;;  %v3813_v44 = vpop.permute.xlu1 %3812 }
 0x635   : > { %6340 = vmatprep.subr.bf16.mxu1 %v6594_v6 }
 0x636   : > { %v6344_v36 = vpack.c.bf16 %v3939_v46, %v3932_v42 }
 0x638   : > { %6342 = vmatpush3.bf16.msra.mxu1 %v6341_v9 }
 0x639   : > { %6343 = vmatprep.subr.bf16.mxu1 %v6594_v6 }
 0x63c   : > { %6345 = vmatpush3.bf16.msra.mxu1 %v6344_v36 }
 0x63d   : > { %6346 = vmatprep.subr.bf16.mxu1 %v6594_v6 }
 0x63f   : > { %5828 = vmatmul.mubr.f32.vlgmr.msra.gmra.mrb[4].mxu1 %v7475_v31 }
 0x640   : > { %6348 = vmatpush3.bf16.msra.mxu1 %v6347_v47  ;;  %5842 = vmatprep.mubr.msk.f32.mxu1 %vm6595_vm0, %v6592_v54 }
 0x641   : > { %6349 = vmatprep.subr.bf16.mxu1 %v6594_v6 }
 0x644   : > { %6351 = vmatpush3.bf16.msra.mxu1 %v6350_v60 }
 0x645   : > { %6352 = vmatprep.subr.bf16.mxu1 %v6594_v6 }
 0x648   : > { %6354 = vmatpush3.bf16.msra.mxu1 %v6353_v1 }
 0x649   : > { %6355 = vmatprep.subr.bf16.mxu1 %v6594_v6 }
 0x64b   : > { %5843 = vmatmul.mubr.f32.vlgmr.msra.gmra.mrb[4].mxu1 %v7480_v8 }
 0x64c   : > { %6357 = vmatpush3.bf16.msra.mxu1 %v7456_v30  ;;  %5857 = vmatprep.mubr.msk.f32.mxu1 %vm6595_vm0, %v6592_v54 }
 0x64d   : > { %6358 = vmatprep.subr.bf16.mxu1 %v6594_v6 }
 0x650   : > { %6360 = vmatpush3.bf16.msra.mxu1 %v7484_v5 }
 0x651   : > { %6361 = vmatprep.subr.bf16.mxu1 %v6594_v6 }
 0x654   : > { %6363 = vmatpush3.bf16.msra.mxu1 %v6335_v24 }
 0x655   : > { %6364 = vmatprep.subr.bf16.mxu1 %v6594_v6 }
 0x657   : > { %5858 = vmatmul.mubr.f32.vlgmr.msra.gmra.mrb[4].mxu1 %v3891_v49 }
 0x658   : > { %6366 = vmatpush3.bf16.msra.mxu1 %v7468_v4  ;;  %5872 = vmatprep.mubr.msk.f32.mxu1 %vm6595_vm0, %v6592_v54 }
 0x659   : > { %6367 = vmatprep.subr.bf16.mxu1 %v6594_v6 }
 0x65c   : > { %6369 = vmatpush3.bf16.msra.mxu1 %v6368_v34 }
 0x65d   : > { %6370 = vmatprep.subr.bf16.mxu1 %v6594_v6 }
 0x660   : > { %6372 = vmatpush3.bf16.msra.mxu1 %v6371_v45 }
 0x661   : > { %6373 = vmatprep.subr.bf16.mxu1 %v6594_v6 }
 0x663   : > { %5873 = vmatmul.mubr.f32.vlgmr.msra.gmra.mrb[4].mxu1 %v7475_v31 }
 0x664   : > { %6375 = vmatpush3.bf16.msra.mxu1 %v7456_v30  ;;  %5887 = vmatprep.mubr.msk.f32.mxu1 %vm6595_vm0, %v6592_v54 }
 0x665   : > { %6376 = vmatprep.subr.bf16.mxu1 %v6594_v6 }
 0x668   : > { %6378 = vmatpush3.bf16.msra.mxu1 %v7484_v5 }
 0x669   : > { %6379 = vmatprep.subr.bf16.mxu1 %v6594_v6  ;;  %v4369_v6 = vld [vmem:[%s7603_s7] sm:$0x1f] }
 0x66a   : > { %v4376_v28 = vsel %vm4371_vm13, %v4369_v6, 0 }
 0x66b   : > { %v4379_v29 = vand.u32 4294901760, %v4376_v28 }
 0x66c   : > { %6381 = vmatpush3.bf16.msra.mxu1 %v6335_v24 }
 0x66d   : > { %5891 = vmatpush3.xpose.msra.mxu0 %v4379_v29  ;;  %v4456_v61 = vsub.f32 %v4376_v28, %v4379_v29 }
 0x66e   : > { %5895 = vmatprep.subr.mxu0 %v6592_v54 }
 0x66f   : > { %5888 = vmatmul.mubr.f32.vlgmr.msra.gmra.mrb[4].mxu1 %v7475_v31  ;;  %v4457_v62 = vand.u32 4294901760, %v4456_v61 }
 0x671   : > { %v4458_v41 = vsub.f32 %v4456_v61, %v4457_v62 }
 0x673   : > { %v4459_v31 = vand.u32 4294901760, %v4458_v41 }
 0x742   : > { %v4325_v7 = vpop.f32.mrb[4].mxu1 }
 0x743   : > { %v6386_v22 = vadd.f32 %v4325_v7, %v3813_v44  ;;  %v5889_v19 = vpop.f32.mrb[5].mxu1 }
 0x745   : > { %v4329_v21 = vmax.f32 %v6386_v22, 0.0 }
 0x747   : > { %4338 = vrot.lane.b32.xlu1 %v4329_v21, %s6596_s24  ;;  %4333 = vrot.lane.b32.xlu0 %v4329_v21, %s6597_s25  ;;  %4331 = vst.msk [vmem:[#allocation3] sm:$0x1] %vm4330_vm12, %v4329_v21  ;;  %s4987_s24 = sshll.u32 %s6675_s13, 4  ;;  %s322_s25 = scalar_lea.vmem [#allocation4], %s321_s23 }
 0x748   : > { %s7554_s16 = scalar_lea.hbm %s7605_s9, %s4987_s24  ;;  %s6603_s13 = smov [#allocation4]  }
 0x74b   : > { %4348 = vrot.lane.b32.xlu1 %v4329_v21, %s6598_s26  ;;  %4343 = vrot.lane.b32.xlu0 %v4329_v21, %s6599_s27  ;;  %s4839_s26 = sshll.u32 %s322_s25, 4  ;;  %s7556_s26 = int_to_ptr.vmem [resolvable:$true] %s4839_s26 }
 0x74f   : > { %4358 = vrot.lane.b32.xlu1 %v4329_v21, %s6600_s17  ;;  %4353 = vrot.lane.b32.xlu0 %v4329_v21, %s6601_s21  ;;  %s4827_s17 = scalar_lea.sflag [#allocation5], %s321_s23  ;;  %s6524_s21 = scalar_lea.vmem %s7556_s26, 16 }
 0x750   : > { %p6525_p11 = scmp.ne.s32.totalorder %s7556_s26, %s6524_s21 }
 0x752   : > { %p6526_p12 = pnand %p6525_p11, %p6692_p5 }
 0x753   : > { %4363 = vrot.lane.b32.xlu0 %v4329_v21, %s6602_s22  ;;  %s6528_s22 = sshll.u32 %s6603_s13, 4  ;;  %s6529_s22 = int_to_ptr.vmem [resolvable:$false] %s6528_s22 }
 0x754   : > { %p6527_p13 = pneg %p6526_p12  ;;  %s6530_s28 = scalar_lea.vmem %s6529_s22, 32 }
 0x755   : > { %p6531_p0 = scmp.lt.s32.totalorder %s7556_s26, %s6529_s22  ;;  %p6532_p1 = scmp.lt.s32.totalorder %s6530_s28, %s6524_s21 }
 0x757   : > { %p6533_p2 = por %p6532_p1, %p6531_p0 }
 0x759   : > { %p6534_p3 = pnand %p6533_p2, %p6527_p13 }
 0x7b9   : > { %v4339_v39 = vpop.permute.xlu1 %4338  ;;  %v4334_v30 = vpop.permute.xlu0 %4333 }
 0x7ba   : > { %4337 = vst.msk [vmem:[#allocation3 - $0x1] sm:$0x2] %vm4336_vm14, %v4334_v30 }
 0x7bb   : > { %4342 = vst.msk [vmem:[#allocation3 - $0x2] sm:$0x4] %vm4341_vm4, %v4339_v39 }
 0x7bd   : > { %v4349_v0 = vpop.permute.xlu1 %4348  ;;  %v4344_v14 = vpop.permute.xlu0 %4343 }
 0x7be   : > { %4347 = vst.msk [vmem:[#allocation3 - $0x3] sm:$0x8] %vm4346_vm9, %v4344_v14 }
 0x7bf   : > { %4352 = vst.msk [vmem:[#allocation3 - $0x4] sm:$0x10] %vm4351_vm5, %v4349_v0 }
 0x7c1   : > { %v4359_v16 = vpop.permute.xlu1 %4358  ;;  %v4354_v47 = vpop.permute.xlu0 %4353 }
 0x7c2   : > { %4357 = vst.msk [vmem:[#allocation3 - $0x5] sm:$0x20] %vm4356_vm7, %v4354_v47 }
 0x7c3   : > { %4362 = vst.msk [vmem:[#allocation3 - $0x6] sm:$0x40] %vm4361_vm6, %v4359_v16 }
 0x7c5   : > { %v4364_v38 = vpop.permute.xlu0 %4363 }
 0x7c6   : > { %4367 = vst.msk [vmem:[#allocation3 - $0x7] sm:$0x80] %vm4366_vm15, %v4364_v38 }
 0x7cd   : > { %v4368_v4 = vld [vmem:[#allocation3] sm:$0x1] }
 0x7ce   : > { %v4373_v25 = vsel %vm4371_vm13, %v4368_v4, 0 }
 0x7cf   : > { %v4444_v50 = vand.u32 4294901760, %v4373_v25 }
 0x7d1   : > { %v4445_v51 = vsub.f32 %v4373_v25, %v4444_v50 }
 0x7d3   : > { %v4446_v2 = vand.u32 4294901760, %v4445_v51 }
 0x7d5   : > { %v4447_v40 = vsub.f32 %v4445_v51, %v4446_v2 }
 0x7d7   : > { %v4448_v56 = vand.u32 4294901760, %v4447_v40 }
 0x7d9   : > { %5893 = vmatmul.mubr.f32.vlgmr.msra.gmra.mrb[8].mxu0 %v4448_v56 }
 0x7da   : > { %5896 = vmatpush3.xpose.msra.mxu0 %v4459_v31  ;;  %5897 = vmatprep.mubr.msk.f32.mxu0 %vm6595_vm0, %v6592_v54 }
 0x7db   : > { %5900 = vmatprep.subr.mxu0 %v6592_v54 }
 0x7e1   : > { %5898 = vmatmul.mubr.f32.vlgmr.msra.gmra.mrb[8].mxu0 %v4444_v50 }
 0x7e2   : > { %5901 = vmatpush3.xpose.msra.mxu0 %v4456_v61  ;;  %5902 = vmatprep.mubr.msk.f32.mxu0 %vm6595_vm0, %v6592_v54 }
 0x7e3   : > { %5905 = vmatprep.subr.mxu0 %v6592_v54 }
 0x7e9   : > { %5903 = vmatmul.mubr.f32.vlgmr.msra.gmra.mrb[8].mxu0 %v4445_v51 }
 0x7ea   : > { %5906 = vmatpush3.xpose.msra.mxu0 %v4379_v29  ;;  %5907 = vmatprep.mubr.msk.f32.mxu0 %vm6595_vm0, %v6592_v54 }
 0x7eb   : > { %5910 = vmatprep.subr.mxu0 %v6592_v54 }
 0x7f1   : > { %5908 = vmatmul.mubr.f32.vlgmr.msra.gmra.mrb[8].mxu0 %v4446_v2 }
 0x7f2   : > { %5911 = vmatpush3.xpose.msra.mxu0 %v4457_v62  ;;  %5912 = vmatprep.mubr.msk.f32.mxu0 %vm6595_vm0, %v6592_v54 }
 0x7f3   : > { %5915 = vmatprep.subr.mxu0 %v6592_v54 }
 0x7f9   : > { %5913 = vmatmul.mubr.f32.vlgmr.msra.gmra.mrb[8].mxu0 %v4444_v50 }
 0x7fa   : > { %5916 = vmatpush3.xpose.msra.mxu0 %v4379_v29  ;;  %5917 = vmatprep.mubr.msk.f32.mxu0 %vm6595_vm0, %v6592_v54 }
 0x801   : > { %5918 = vmatmul.mubr.f32.vlgmr.msra.gmra.mrb[8].mxu0 %v4444_v50 }
 0x8d4   : > { %v4820_v8 = vpop.f32.mrb[8].mxu0 }
 0x8d5   : > { %v6387_v20 = vadd.f32 %v4820_v8, %v4370_v26  ;;  %v5919_v33 = vpop.f32.mrb[9].mxu0 }
 0x8d7   : > { %4825 = vst.msk [vmem:[%s322_s25] sm:$0x1] %vm4824_vm8, %v6387_v20 }
 0x8d8   : > { %6537 = shalt.err (!%p6534_p3)
}
 0x8d9   : > { %s6538_s23 = scalar_lea.hbm %s7554_s16, 16  ;;  %s6542_s25 = scalar_lea.hbm %s7605_s9, 32 }
 0x8da   : > { %p6539_p4 = scmp.ne.s32.totalorder %s7554_s16, %s6538_s23  ;;  %p6543_p9 = scmp.lt.u32.totalorder %s7554_s16, %s7605_s9 }
 0x8db   : > { %p6544_p10 = scmp.lt.u32.totalorder %s6542_s25, %s6538_s23  ;;  %p6546_p12 = scmp.lt.u32.totalorder %s6538_s23, %s7554_s16 }
 0x8dc   : > { %p6540_p7 = pnand %p6539_p4, %p6692_p5 }
 0x8dd   : > { %p6545_p11 = por %p6544_p10, %p6543_p9 }
 0x8de   : > { %p6541_p8 = pneg %p6540_p7 }
 0x8df   : > { %p6547_p13 = por %p6546_p12, %p6545_p11 }
 0x8e1   : > { %p6548_p0 = pnand %p6547_p13, %p6541_p8 }
 0x8e3   : > { %6551 = shalt.err (!%p6548_p0)
}
 0x8e4   : > { %6468 = dma.vmem_to_hbm [thread:$0]  (%p6692_p5), %s7556_s26, 16, %s7554_s16, %s4827_s17  }
 0x8e5 PF: > { %p6474_p1 = scmp.ge.s32.totalorder %s6586_s12, 2  ;;  %s4851_s21 = sand.u32 1, %s6574_s30  }
 0x8e6   : > { %s4852_s13 = scalar_lea.sflag [#allocation5], %s4851_s21 }
 0x8e7   : > { %p6471_p2 = pnand %p6474_p1, %p6696_p6 }
 0x8e9   : > { %6569 = dma.done.wait (!%p6471_p2), %s4852_s13, 16  }
 0x8ea   : > { %6571 = vsyncadd (!%p6471_p2), %s4852_s13, 4294967280  ;;  %p19_p3 = scmp.ge.s32.totalorder %s6679_s15, 4   ;;  %s7647_s30 = smov %s6578_s10 }
 0x8eb   : > { %s7648_s10 = smov %s6582_s11  ;;  %s7649_s11 = smov %s6690_s18 }
 0x8ec   : > { %s7650_s12 = smov %s6679_s15  ;;  %21 = sbr.rel (!%p19_p3) target bundleno = 3 (0x3), region = 91 }
 0x8f3   :  { %4856 = vsyncpa [#allocation5], 1 }
 0x8f4   :  { %4858 = vsyncpa [#allocation5 + $0x1], 1 }

</bundles_post_ra>
